<compile_context>
chip_gen: v5e
topology: v5e:2x2
jax: 0.10.0
libtpu: 0.0.40
codegen_flags: <defaults>
</compile_context>

<pallas_src>
import functools

import jax
import jax.numpy as jnp
from jax import lax
from jax.experimental import pallas as pl
from jax.experimental.pallas import tpu as pltpu

_VMEM = pltpu.MemorySpace.VMEM
_PAD = 8          # sublane-aligned conv halo (supports odd kernel_size <= 17)
_GN_EPS = 1e-5


def _silu(x):
    return x * jax.nn.sigmoid(x)


def _decoder_block_kernel(
        # per-batch activation blocks
        xu_ref, skip_ref, tc_ref,
        # per-batch precombined FiLM vectors (resident, row-indexed by program_id)
        fmul_ref, fadd_ref,
        # weights (VMEM-resident across the whole grid)
        up_w, up_b, c1_w, c1_b, gn1_g, gn1_b, gn_avg,
        c2_w, c2_b, gn2_g, gn2_b, to_w, to_b,
        # output + scratch
        o_ref, pad_buf):
    i = pl.program_id(0)
    f32 = jnp.float32
    L2 = o_ref.shape[1]
    in_c = xu_ref.shape[2]
    skip_c = skip_ref.shape[2]
    tcc = tc_ref.shape[2]
    out_c = up_w.shape[2]
    mxu_dtype = to_w.dtype
    pad_dtype = pad_buf.dtype
    n_rows, c_buf = pad_buf.shape

    # Zero ONLY the halo rows, every grid step (cheap: 2*_PAD rows).  Do NOT
    # gate this on program_id == 0: under megacore "parallel" semantics the
    # second TensorCore never sees i == 0 and would read garbage halos.
    zero_halo = jnp.zeros((_PAD, c_buf), pad_dtype)
    pad_buf[0:_PAD, :] = zero_halo
    pad_buf[n_rows - _PAD:n_rows, :] = zero_halo

    def conv_same(cin, w_ref, b_row):
        # 'same' Conv1d on the slab currently held in pad_buf[_PAD:_PAD+L2, :cin]
        # as k shifted MXU matmuls with f32 accumulation.  The slab was cast to
        # pad_dtype (== mxu dtype) once when stored; halo rows are zero, and
        # columns beyond `cin` are never read.
        k = w_ref.shape[0]
        cout = w_ref.shape[2]
        pad_l = (k - 1) // 2
        acc = jnp.zeros((L2, cout), f32)
        for t in range(k):                              # static, unrolled taps
            s = _PAD - pad_l + t
            acc = acc + jnp.dot(pad_buf[s:s + L2, 0:cin], w_ref[t],
                                preferred_element_type=f32)
        return acc + b_row[...]

    def group_norm(x, gamma, beta):
        # nn.GroupNorm (biased variance, centered two-pass).  The per-group
        # mean/var averaging + broadcast-back is one block-diagonal matmul
        # (gn_avg folds the 1/(L2*Cg) factor), avoiding lane-axis
        # reshape/repeat relayouts.
        s1 = jnp.sum(x, axis=0, keepdims=True)                       # (1, C)
        mean = jnp.dot(s1, gn_avg[...], preferred_element_type=f32)  # (1, C)
        xc = x - mean
        s2 = jnp.sum(xc * xc, axis=0, keepdims=True)
        var = jnp.dot(s2, gn_avg[...], preferred_element_type=f32)
        inv = lax.rsqrt(var + _GN_EPS)
        return xc * inv * gamma[...] + beta[...]

    # ---- up: Conv1d(k=3, 'same') on the nearest-upsampled signal ------------
    pad_buf[_PAD:_PAD + L2, 0:in_c] = xu_ref[0].astype(pad_dtype)
    h_up = conv_same(in_c, up_w, up_b)                   # (L2, out_c) f32
    res = h_up                                           # ConvBlock residual

    # ---- conv1 on concat([h_up, skip, time_cond]): the three slabs are laid
    # ---- side by side in pad_buf columns so each tap is ONE deep matmul -----
    c_tot = out_c + skip_c + tcc
    pad_buf[_PAD:_PAD + L2, 0:out_c] = h_up.astype(pad_dtype)
    pad_buf[_PAD:_PAD + L2, out_c:out_c + skip_c] = skip_ref[0].astype(pad_dtype)
    pad_buf[_PAD:_PAD + L2, out_c + skip_c:c_tot] = tc_ref[0].astype(pad_dtype)
    h = conv_same(c_tot, c1_w, c1_b)

    # ---- GroupNorm1 -> SiLU -> fused FiLM (time & zsem combined) -> SiLU ----
    h = _silu(group_norm(h, gn1_g, gn1_b))
    fmul = fmul_ref[pl.ds(i, 1), :]                      # (1, out_c)
    fadd = fadd_ref[pl.ds(i, 1), :]
    h = _silu(h * fmul + fadd)

    # ---- conv2 -> GroupNorm2 -> SiLU -----------------------------------------
    pad_buf[_PAD:_PAD + L2, 0:out_c] = h.astype(pad_dtype)
    h = conv_same(out_c, c2_w, c2_b)
    h = _silu(group_norm(h, gn2_g, gn2_b))

    # ---- residual: to_out (1x1 conv) fused as a single MXU matmul -----------
    h = h + jnp.dot(res.astype(mxu_dtype), to_w[...],
                    preferred_element_type=f32) + to_b[...]

    o_ref[0] = h.astype(o_ref.dtype)


# --------------------------------------------------------------------------
# Full DecoderBlock1D forward (self_attn = Identity, no cross-attention).
# --------------------------------------------------------------------------
def decoder_block_1d(params, x_ncl, skip_ncl, time, time_cond_ncl, zsem, *,
                     ratio, out_c, kernel_size=3, matmul_dtype=jnp.bfloat16,
                     stream_dtype=None, out_dtype=None):
    f32 = jnp.float32
    cast_s = (lambda a: a.astype(stream_dtype)) if stream_dtype is not None else (lambda a: a)

    # NCL -> NLC (channels on the lane axis).  Activations are NOT promoted to
    # f32: they are DMA'd in their native / requested stream dtype and cast
    # inside the kernel only where needed.
    x = cast_s(jnp.transpose(x_ncl, (0, 2, 1)))
    skip = cast_s(jnp.transpose(skip_ncl, (0, 2, 1)))
    tcond = cast_s(jnp.transpose(time_cond_ncl, (0, 2, 1)))

    B, L, in_c = x.shape
    L2 = L * ratio
    K = kernel_size
    skip_c = skip.shape[-1]
    tcc = tcond.shape[-1]
    G = min(16, out_c)
    assert K % 2 == 1, "PyTorch 'same' padding path assumes an odd kernel size"
    assert out_c % G == 0, "GroupNorm requires out_c divisible by num_groups"
    assert (K - 1) // 2 <= _PAD
    assert skip.shape[1] == L2 and tcond.shape[1] == L2

    # Nearest-neighbour upsample fused with the transpose/cast above into a
    # single XLA copy.
    # TODO(synk): fold the repeat fully in-kernel (strided sublane stores into
    # the halo buffer) to also drop this (B, L2, in_c) HBM materialization.
    xu = jnp.repeat(x, ratio, axis=1) if ratio != 1 else x

    # FiLM MLPs hoisted out of the per-batch kernel loop: tiny (B, .) matmuls in
    # plain XLA once, instead of M=1 MXU pushes per grid step.  The two affine
    # transforms are algebraically combined into one (mult, add) pair.
    tvec = jax.nn.silu(time.astype(f32) @ params['tm_w1'] + params['tm_b1'])
    tvec = tvec @ params['tm_w2'] + params['tm_b2']
    cvec = jax.nn.silu(zsem.astype(f32) @ params['cm_w1'] + params['cm_b1'])
    cvec = cvec @ params['cm_w2'] + params['cm_b2']
    tmul, tadd = tvec[:, :out_c], tvec[:, out_c:]
    cmul, cadd = cvec[:, :out_c], cvec[:, out_c:]
    film_mul = (tmul * cmul).astype(f32)          # (h*tm+ta)*cm+ca == h*(tm*cm)+(ta*cm+ca)
    film_add = (tadd * cmul + cadd).astype(f32)

    # Block-diagonal group-averaging matrix for GroupNorm (folds 1/(L2*Cg)).
    Cg = out_c // G
    gid = jnp.arange(out_c) // Cg
    gn_avg = (gid[:, None] == gid[None, :]).astype(f32) / float(L2 * Cg)

    md = matmul_dtype
    wc = lambda a: a.astype(md)       # MXU operands (bf16 default, f32 accumulate)
    weights = (
        wc(params['up_w']), params['up_b'],
        wc(params['c1_w']), params['c1_b'],
        params['gn1_g'], params['gn1_b'], gn_avg,
        wc(params['c2_w']), params['c2_b'],
        params['gn2_g'], params['gn2_b'],
        wc(params['to_w']), params['to_b'],
    )

    c_buf = max(in_c, out_c + skip_c + tcc)
    out_dt = out_dtype if out_dtype is not None else x_ncl.dtype
    per_batch = lambda length, ch: pl.BlockSpec((1, length, ch), lambda b: (b, 0, 0))
    resident = pl.BlockSpec(memory_space=_VMEM)   # whole array, VMEM-resident

    out_nlc = pl.pallas_call(
        _decoder_block_kernel,
        grid=(B,),
        in_specs=[per_batch(L2, in_c),          # upsampled x
                  per_batch(L2, skip_c),        # skip
                  per_batch(L2, tcc),           # time_cond
                  resident, resident]           # film_mul, film_add
                 + [resident] * len(weights),
        out_specs=per_batch(L2, out_c),
        out_shape=jax.ShapeDtypeStruct((B, L2, out_c), out_dt),
        scratch_shapes=[pltpu.VMEM((2 * _PAD + L2, c_buf), md)],
        compiler_params=pltpu.CompilerParams(
            # Batch elements are independent -> sharded across v7x's 2 TCs.
            dimension_semantics=("parallel",),
            # 48 MiB: plenty on v5e/v6e (128 MiB), leaves headroom on v7x (64 MiB).
            vmem_limit_bytes=48 * 1024 * 1024,
        ),
    )(xu, skip, tcond, film_mul, film_add, *weights)

    # self_attn is nn.Identity (use_self_attn=False); cross_attn_channels == 0.
    return jnp.transpose(out_nlc, (0, 2, 1))


# --------------------------------------------------------------------------
# Deterministic synthetic parameter init (shapes from the module __init__).
# --------------------------------------------------------------------------
def init_params(key, *, in_c, out_c, time_cond_channels, time_channels,
                cond_channels, kernel_size):
    keys = iter(jax.random.split(key, 20))

    def nrm(shape, scale):
        return scale * jax.random.normal(next(keys), shape, jnp.float32)

    skip_channels = out_c                      # skip_size=None -> out_c
    c1_in = out_c + skip_channels + time_cond_channels
    return {
        'up_w': nrm((3, in_c, out_c), 0.2), 'up_b': nrm((1, out_c), 0.05),
        'c1_w': nrm((kernel_size, c1_in, out_c), 0.15), 'c1_b': nrm((1, out_c), 0.05),
        'gn1_g': 1.0 + nrm((1, out_c), 0.1), 'gn1_b': nrm((1, out_c), 0.1),
        'c2_w': nrm((kernel_size, out_c, out_c), 0.2), 'c2_b': nrm((1, out_c), 0.05),
        'gn2_g': 1.0 + nrm((1, out_c), 0.1), 'gn2_b': nrm((1, out_c), 0.1),
        'tm_w1': nrm((time_channels, 128), 0.2), 'tm_b1': nrm((1, 128), 0.05),
        'tm_w2': nrm((128, 2 * out_c), 0.1), 'tm_b2': nrm((1, 2 * out_c), 0.05),
        'cm_w1': nrm((cond_channels, 128), 0.2), 'cm_b1': nrm((1, 128), 0.05),
        'cm_w2': nrm((128, 2 * out_c), 0.1), 'cm_b2': nrm((1, 2 * out_c), 0.05),
        'to_w': nrm((out_c, out_c), 0.3), 'to_b': nrm((1, out_c), 0.05),
    }


# --------------------------------------------------------------------------
# Pure-JAX reference (same math, no Pallas) for correctness checks.
# --------------------------------------------------------------------------
def _ref_conv1d(x, w, b):
    B, L, Cin = x.shape
    K, _, Cout = w.shape
    pad_l = (K - 1) // 2
    xp = jnp.pad(x, ((0, 0), (pad_l, K - 1 - pad_l), (0, 0)))
    out = jnp.zeros((B, L, Cout), jnp.float32)
    for t in range(K):
        out = out + jnp.einsum('blc,co->blo', xp[:, t:t + L, :], w[t])
    return out + b[None]


def _ref_gn(x, gamma, beta, G, eps=_GN_EPS):
    B, L, C = x.shape
    Cg = C // G
    xg = x.reshape(B, L, G, Cg)
    mean = xg.mean(axis=(1, 3), keepdims=True)
    var = ((xg - mean) ** 2).mean(axis=(1, 3), keepdims=True)
    xn = ((xg - mean) / jnp.sqrt(var + eps)).reshape(B, L, C)
    return xn * gamma[:, None, :] + beta[:, None, :]


def reference_forward(params, x_ncl, skip_ncl, time, time_cond_ncl, zsem, *,
                      ratio, out_c):
    x = jnp.transpose(x_ncl, (0, 2, 1))
    skip = jnp.transpose(skip_ncl, (0, 2, 1))
    tcond = jnp.transpose(time_cond_ncl, (0, 2, 1))
    x = jnp.repeat(x, ratio, axis=1)
    x = _ref_conv1d(x, params['up_w'], params['up_b'])
    res = x
    h = jnp.concatenate([x, skip, tcond], axis=-1)
    h = _ref_conv1d(h, params['c1_w'], params['c1_b'])
    G = min(16, out_c)
    h = jax.nn.silu(_ref_gn(h, params['gn1_g'], params['gn1_b'], G))
    tvec = jax.nn.silu(time @ params['tm_w1'] + params['tm_b1']) @ params['tm_w2'] + params['tm_b2']
    cvec = jax.nn.silu(zsem @ params['cm_w1'] + params['cm_b1']) @ params['cm_w2'] + params['cm_b2']
    h = h * tvec[:, None, :out_c] + tvec[:, None, out_c:]
    h = h * cvec[:, None, :out_c] + cvec[:, None, out_c:]
    h = jax.nn.silu(h)
    h = _ref_conv1d(h, params['c2_w'], params['c2_b'])
    h = jax.nn.silu(_ref_gn(h, params['gn2_g'], params['gn2_b'], G))
    h = h + jnp.einsum('blc,co->blo', res, params['to_w']) + params['to_b'][None]
    return jnp.transpose(h, (0, 2, 1))


if __name__ == "__main__":
    B, in_c, out_c, L = 2, 8, 8, 16
    ratio = 2
    time_channels, cond_channels, time_cond_channels, kernel_size = 16, 16, 4, 3
    L2 = L * ratio

    key = jax.random.PRNGKey(0)
    kp, kx, ks, kt, ktc, kz = jax.random.split(key, 6)
    params = init_params(kp, in_c=in_c, out_c=out_c,
                         time_cond_channels=time_cond_channels,
                         time_channels=time_channels,
                         cond_channels=cond_channels,
                         kernel_size=kernel_size)

    # PyTorch-convention inputs (NCL for conv tensors).
    x = jax.random.normal(kx, (B, in_c, L), jnp.float32)
    skip = jax.random.normal(ks, (B, out_c, L2), jnp.float32)
    time = jax.random.normal(kt, (B, time_channels), jnp.float32)
    time_cond = jax.random.normal(ktc, (B, time_cond_channels, L2), jnp.float32)
    zsem = jax.random.normal(kz, (B, cond_channels), jnp.float32)

    ref = reference_forward(params, x, skip, time, time_cond, zsem,
                            ratio=ratio, out_c=out_c)

    # f32-MXU / f32-stream variant: tight numerical check against the reference.
    fwd_f32 = jax.jit(functools.partial(
        decoder_block_1d, ratio=ratio, out_c=out_c, kernel_size=kernel_size,
        matmul_dtype=jnp.float32))
    out_f32 = jax.block_until_ready(fwd_f32(params, x, skip, time, time_cond, zsem))
    assert out_f32.shape == (B, out_c, L2), out_f32.shape
    assert bool(jnp.all(jnp.isfinite(out_f32)))
    err32 = float(jnp.max(jnp.abs(out_f32 - ref)))
    assert bool(jnp.allclose(out_f32, ref, rtol=1e-3, atol=1e-3)), err32

    # Production config: bf16 MXU + bf16 activation streams (f32 accumulation);
    # loose check against the f32 reference.
    fwd_bf16 = jax.jit(functools.partial(
        decoder_block_1d, ratio=ratio, out_c=out_c, kernel_size=kernel_size,
        matmul_dtype=jnp.bfloat16, stream_dtype=jnp.bfloat16,
        out_dtype=jnp.float32))
    out_bf16 = jax.block_until_ready(fwd_bf16(params, x, skip, time, time_cond, zsem))
    assert out_bf16.shape == (B, out_c, L2), out_bf16.shape
    assert bool(jnp.all(jnp.isfinite(out_bf16)))
    errbf = float(jnp.max(jnp.abs(out_bf16 - ref)))
    assert bool(jnp.allclose(out_bf16, ref, rtol=2.5e-1, atol=2.5e-1)), errbf

    print("KERNEL_OK")
</pallas_src>

<mosaic_0001>
module attributes {stable_mosaic.version = 11 : i64} {
  func.func @_decoder_block_kernel(%arg0: i32, %arg1: memref<1x32x8xf32, #tpu.memory_space<vmem>>, %arg2: memref<1x32x8xf32, #tpu.memory_space<vmem>>, %arg3: memref<1x32x4xf32, #tpu.memory_space<vmem>>, %arg4: memref<2x8xf32, #tpu.memory_space<vmem>>, %arg5: memref<2x8xf32, #tpu.memory_space<vmem>>, %arg6: memref<3x8x8xf32, #tpu.memory_space<vmem>>, %arg7: memref<1x8xf32, #tpu.memory_space<vmem>>, %arg8: memref<3x20x8xf32, #tpu.memory_space<vmem>>, %arg9: memref<1x8xf32, #tpu.memory_space<vmem>>, %arg10: memref<1x8xf32, #tpu.memory_space<vmem>>, %arg11: memref<1x8xf32, #tpu.memory_space<vmem>>, %arg12: memref<8x8xf32, #tpu.memory_space<vmem>>, %arg13: memref<3x8x8xf32, #tpu.memory_space<vmem>>, %arg14: memref<1x8xf32, #tpu.memory_space<vmem>>, %arg15: memref<1x8xf32, #tpu.memory_space<vmem>>, %arg16: memref<1x8xf32, #tpu.memory_space<vmem>>, %arg17: memref<8x8xf32, #tpu.memory_space<vmem>>, %arg18: memref<1x8xf32, #tpu.memory_space<vmem>>, %arg19: memref<1x32x8xf32, #tpu.memory_space<vmem>>, %arg20: memref<48x20xf32, #tpu.memory_space<vmem>>) attributes {dimension_semantics = [#tpu.dimension_semantics<parallel>], iteration_bounds = array<i64: 2>, scalar_prefetch = 0 : i64, scratch_operands = 1 : i64, tpu.core_type = #tpu.core_type<tc>, window_params = [{transform_indices = @transform_0, window_bounds = array<i64: 1, 32, 8>}, {transform_indices = @transform_1, window_bounds = array<i64: 1, 32, 8>}, {transform_indices = @transform_2, window_bounds = array<i64: 1, 32, 4>}, {pipeline_mode = #tpu.pipeline_mode<synchronous>, transform_indices = @transform_3, window_bounds = array<i64: 2, 8>}, {pipeline_mode = #tpu.pipeline_mode<synchronous>, transform_indices = @transform_4, window_bounds = array<i64: 2, 8>}, {pipeline_mode = #tpu.pipeline_mode<synchronous>, transform_indices = @transform_5, window_bounds = array<i64: 3, 8, 8>}, {pipeline_mode = #tpu.pipeline_mode<synchronous>, transform_indices = @transform_6, window_bounds = array<i64: 1, 8>}, {pipeline_mode = #tpu.pipeline_mode<synchronous>, transform_indices = @transform_7, window_bounds = array<i64: 3, 20, 8>}, {pipeline_mode = #tpu.pipeline_mode<synchronous>, transform_indices = @transform_8, window_bounds = array<i64: 1, 8>}, {pipeline_mode = #tpu.pipeline_mode<synchronous>, transform_indices = @transform_9, window_bounds = array<i64: 1, 8>}, {pipeline_mode = #tpu.pipeline_mode<synchronous>, transform_indices = @transform_10, window_bounds = array<i64: 1, 8>}, {pipeline_mode = #tpu.pipeline_mode<synchronous>, transform_indices = @transform_11, window_bounds = array<i64: 8, 8>}, {pipeline_mode = #tpu.pipeline_mode<synchronous>, transform_indices = @transform_12, window_bounds = array<i64: 3, 8, 8>}, {pipeline_mode = #tpu.pipeline_mode<synchronous>, transform_indices = @transform_13, window_bounds = array<i64: 1, 8>}, {pipeline_mode = #tpu.pipeline_mode<synchronous>, transform_indices = @transform_14, window_bounds = array<i64: 1, 8>}, {pipeline_mode = #tpu.pipeline_mode<synchronous>, transform_indices = @transform_15, window_bounds = array<i64: 1, 8>}, {pipeline_mode = #tpu.pipeline_mode<synchronous>, transform_indices = @transform_16, window_bounds = array<i64: 8, 8>}, {pipeline_mode = #tpu.pipeline_mode<synchronous>, transform_indices = @transform_17, window_bounds = array<i64: 1, 8>}, {transform_indices = @transform_18, window_bounds = array<i64: 1, 32, 8>}]} {
    %cst = arith.constant 0.000000e+00 : f32
    %0 = vector.broadcast %cst : f32 to vector<8x20xf32>
    %c0 = arith.constant 0 : index
    %c0_0 = arith.constant 0 : index
    %1 = vector.load %arg20[%c0, %c0_0] : memref<48x20xf32, #tpu.memory_space<vmem>>, vector<8x20xf32>
    tpu.vector_store %arg20[%c0, %c0_0], %0 {strides = array<i32>} : memref<48x20xf32, #tpu.memory_space<vmem>>, vector<8x20xf32>,
    %c40 = arith.constant 40 : index
    %c0_1 = arith.constant 0 : index
    %2 = vector.load %arg20[%c40, %c0_1] : memref<48x20xf32, #tpu.memory_space<vmem>>, vector<8x20xf32>
    tpu.vector_store %arg20[%c40, %c0_1], %0 {strides = array<i32>} : memref<48x20xf32, #tpu.memory_space<vmem>>, vector<8x20xf32>,
    %c0_2 = arith.constant 0 : index
    %c0_3 = arith.constant 0 : index
    %c0_4 = arith.constant 0 : index
    %3 = vector.load %arg1[%c0_2, %c0_3, %c0_4] : memref<1x32x8xf32, #tpu.memory_space<vmem>>, vector<1x32x8xf32>
    %4 = vector.shape_cast %3 : vector<1x32x8xf32> to vector<32x8xf32>
    %c8 = arith.constant 8 : index
    %c0_5 = arith.constant 0 : index
    %5 = vector.load %arg20[%c8, %c0_5] : memref<48x20xf32, #tpu.memory_space<vmem>>, vector<32x8xf32>
    tpu.vector_store %arg20[%c8, %c0_5], %4 {strides = array<i32>} : memref<48x20xf32, #tpu.memory_space<vmem>>, vector<32x8xf32>,
    %cst_6 = arith.constant 0.000000e+00 : f32
    %6 = vector.broadcast %cst_6 : f32 to vector<32x8xf32>
    %c7 = arith.constant 7 : index
    %c0_7 = arith.constant 0 : index
    %7 = vector.load %arg20[%c7, %c0_7] : memref<48x20xf32, #tpu.memory_space<vmem>>, vector<32x8xf32>
    %c0_8 = arith.constant 0 : index
    %c0_9 = arith.constant 0 : index
    %c0_10 = arith.constant 0 : index
    %8 = vector.load %arg6[%c0_8, %c0_9, %c0_10] : memref<3x8x8xf32, #tpu.memory_space<vmem>>, vector<1x8x8xf32>
    %9 = vector.shape_cast %8 : vector<1x8x8xf32> to vector<8x8xf32>
    %cst_11 = arith.constant dense<0.000000e+00> : vector<32x8xf32>
    %10 = tpu.matmul %7, %9, %cst_11 {dimension_numbers = #tpu.dot_dimension_numbers<[1], [0], [0], [1], [0, 0, 1, 1], [], []>} : vector<32x8xf32>, vector<8x8xf32>, vector<32x8xf32> -> vector<32x8xf32>
    %11 = arith.addf %6, %10 : vector<32x8xf32>
    %c8_12 = arith.constant 8 : index
    %c0_13 = arith.constant 0 : index
    %12 = vector.load %arg20[%c8_12, %c0_13] : memref<48x20xf32, #tpu.memory_space<vmem>>, vector<32x8xf32>
    %c1 = arith.constant 1 : index
    %c0_14 = arith.constant 0 : index
    %c0_15 = arith.constant 0 : index
    %13 = vector.load %arg6[%c1, %c0_14, %c0_15] : memref<3x8x8xf32, #tpu.memory_space<vmem>>, vector<1x8x8xf32>
    %14 = vector.shape_cast %13 : vector<1x8x8xf32> to vector<8x8xf32>
    %cst_16 = arith.constant dense<0.000000e+00> : vector<32x8xf32>
    %15 = tpu.matmul %12, %14, %cst_16 {dimension_numbers = #tpu.dot_dimension_numbers<[1], [0], [0], [1], [0, 0, 1, 1], [], []>} : vector<32x8xf32>, vector<8x8xf32>, vector<32x8xf32> -> vector<32x8xf32>
    %16 = arith.addf %11, %15 : vector<32x8xf32>
    %c9 = arith.constant 9 : index
    %c0_17 = arith.constant 0 : index
    %17 = vector.load %arg20[%c9, %c0_17] : memref<48x20xf32, #tpu.memory_space<vmem>>, vector<32x8xf32>
    %c2 = arith.constant 2 : index
    %c0_18 = arith.constant 0 : index
    %c0_19 = arith.constant 0 : index
    %18 = vector.load %arg6[%c2, %c0_18, %c0_19] : memref<3x8x8xf32, #tpu.memory_space<vmem>>, vector<1x8x8xf32>
    %19 = vector.shape_cast %18 : vector<1x8x8xf32> to vector<8x8xf32>
    %cst_20 = arith.constant dense<0.000000e+00> : vector<32x8xf32>
    %20 = tpu.matmul %17, %19, %cst_20 {dimension_numbers = #tpu.dot_dimension_numbers<[1], [0], [0], [1], [0, 0, 1, 1], [], []>} : vector<32x8xf32>, vector<8x8xf32>, vector<32x8xf32> -> vector<32x8xf32>
    %21 = arith.addf %16, %20 : vector<32x8xf32>
    %c0_21 = arith.constant 0 : index
    %c0_22 = arith.constant 0 : index
    %22 = vector.load %arg7[%c0_21, %c0_22] : memref<1x8xf32, #tpu.memory_space<vmem>>, vector<1x8xf32>
    %23 = vector.broadcast %22 : vector<1x8xf32> to vector<32x8xf32>
    %24 = arith.addf %21, %23 : vector<32x8xf32>
    %c8_23 = arith.constant 8 : index
    %c0_24 = arith.constant 0 : index
    %25 = vector.load %arg20[%c8_23, %c0_24] : memref<48x20xf32, #tpu.memory_space<vmem>>, vector<32x8xf32>
    tpu.vector_store %arg20[%c8_23, %c0_24], %24 {strides = array<i32>} : memref<48x20xf32, #tpu.memory_space<vmem>>, vector<32x8xf32>,
    %c0_25 = arith.constant 0 : index
    %c0_26 = arith.constant 0 : index
    %c0_27 = arith.constant 0 : index
    %26 = vector.load %arg2[%c0_25, %c0_26, %c0_27] : memref<1x32x8xf32, #tpu.memory_space<vmem>>, vector<1x32x8xf32>
    %27 = vector.shape_cast %26 : vector<1x32x8xf32> to vector<32x8xf32>
    %c8_28 = arith.constant 8 : index
    %c8_29 = arith.constant 8 : index
    %28 = vector.load %arg20[%c8_28, %c8_29] : memref<48x20xf32, #tpu.memory_space<vmem>>, vector<32x8xf32>
    tpu.vector_store %arg20[%c8_28, %c8_29], %27 {strides = array<i32>} : memref<48x20xf32, #tpu.memory_space<vmem>>, vector<32x8xf32>,
    %c0_30 = arith.constant 0 : index
    %c0_31 = arith.constant 0 : index
    %c0_32 = arith.constant 0 : index
    %29 = vector.load %arg3[%c0_30, %c0_31, %c0_32] : memref<1x32x4xf32, #tpu.memory_space<vmem>>, vector<1x32x4xf32>
    %30 = vector.shape_cast %29 : vector<1x32x4xf32> to vector<32x4xf32>
    %c8_33 = arith.constant 8 : index
    %c16 = arith.constant 16 : index
    %31 = vector.load %arg20[%c8_33, %c16] : memref<48x20xf32, #tpu.memory_space<vmem>>, vector<32x4xf32>
    tpu.vector_store %arg20[%c8_33, %c16], %30 {strides = array<i32>} : memref<48x20xf32, #tpu.memory_space<vmem>>, vector<32x4xf32>,
    %cst_34 = arith.constant 0.000000e+00 : f32
    %32 = vector.broadcast %cst_34 : f32 to vector<32x8xf32>
    %c7_35 = arith.constant 7 : index
    %c0_36 = arith.constant 0 : index
    %33 = vector.load %arg20[%c7_35, %c0_36] : memref<48x20xf32, #tpu.memory_space<vmem>>, vector<32x20xf32>
    %c0_37 = arith.constant 0 : index
    %c0_38 = arith.constant 0 : index
    %c0_39 = arith.constant 0 : index
    %34 = vector.load %arg8[%c0_37, %c0_38, %c0_39] : memref<3x20x8xf32, #tpu.memory_space<vmem>>, vector<1x20x8xf32>
    %35 = vector.shape_cast %34 : vector<1x20x8xf32> to vector<20x8xf32>
    %cst_40 = arith.constant dense<0.000000e+00> : vector<32x8xf32>
    %36 = tpu.matmul %33, %35, %cst_40 {dimension_numbers = #tpu.dot_dimension_numbers<[1], [0], [0], [1], [0, 0, 1, 1], [], []>} : vector<32x20xf32>, vector<20x8xf32>, vector<32x8xf32> -> vector<32x8xf32>
    %37 = arith.addf %32, %36 : vector<32x8xf32>
    %c8_41 = arith.constant 8 : index
    %c0_42 = arith.constant 0 : index
    %38 = vector.load %arg20[%c8_41, %c0_42] : memref<48x20xf32, #tpu.memory_space<vmem>>, vector<32x20xf32>
    %c1_43 = arith.constant 1 : index
    %c0_44 = arith.constant 0 : index
    %c0_45 = arith.constant 0 : index
    %39 = vector.load %arg8[%c1_43, %c0_44, %c0_45] : memref<3x20x8xf32, #tpu.memory_space<vmem>>, vector<1x20x8xf32>
    %40 = vector.shape_cast %39 : vector<1x20x8xf32> to vector<20x8xf32>
    %cst_46 = arith.constant dense<0.000000e+00> : vector<32x8xf32>
    %41 = tpu.matmul %38, %40, %cst_46 {dimension_numbers = #tpu.dot_dimension_numbers<[1], [0], [0], [1], [0, 0, 1, 1], [], []>} : vector<32x20xf32>, vector<20x8xf32>, vector<32x8xf32> -> vector<32x8xf32>
    %42 = arith.addf %37, %41 : vector<32x8xf32>
    %c9_47 = arith.constant 9 : index
    %c0_48 = arith.constant 0 : index
    %43 = vector.load %arg20[%c9_47, %c0_48] : memref<48x20xf32, #tpu.memory_space<vmem>>, vector<32x20xf32>
    %c2_49 = arith.constant 2 : index
    %c0_50 = arith.constant 0 : index
    %c0_51 = arith.constant 0 : index
    %44 = vector.load %arg8[%c2_49, %c0_50, %c0_51] : memref<3x20x8xf32, #tpu.memory_space<vmem>>, vector<1x20x8xf32>
    %45 = vector.shape_cast %44 : vector<1x20x8xf32> to vector<20x8xf32>
    %cst_52 = arith.constant dense<0.000000e+00> : vector<32x8xf32>
    %46 = tpu.matmul %43, %45, %cst_52 {dimension_numbers = #tpu.dot_dimension_numbers<[1], [0], [0], [1], [0, 0, 1, 1], [], []>} : vector<32x20xf32>, vector<20x8xf32>, vector<32x8xf32> -> vector<32x8xf32>
    %47 = arith.addf %42, %46 : vector<32x8xf32>
    %c0_53 = arith.constant 0 : index
    %c0_54 = arith.constant 0 : index
    %48 = vector.load %arg9[%c0_53, %c0_54] : memref<1x8xf32, #tpu.memory_space<vmem>>, vector<1x8xf32>
    %49 = vector.broadcast %48 : vector<1x8xf32> to vector<32x8xf32>
    %50 = arith.addf %47, %49 : vector<32x8xf32>
    %cst_55 = arith.constant dense<0.000000e+00> : vector<8xf32>
    %51 = vector.multi_reduction <add>, %50, %cst_55 [0] : vector<32x8xf32> to vector<8xf32>
    %52 = vector.shape_cast %51 : vector<8xf32> to vector<1x8xf32>
    %c0_56 = arith.constant 0 : index
    %c0_57 = arith.constant 0 : index
    %53 = vector.load %arg12[%c0_56, %c0_57] : memref<8x8xf32, #tpu.memory_space<vmem>>, vector<8x8xf32>
    %cst_58 = arith.constant dense<0.000000e+00> : vector<1x8xf32>
    %54 = tpu.matmul %52, %53, %cst_58 {dimension_numbers = #tpu.dot_dimension_numbers<[1], [0], [0], [1], [0, 0, 1, 1], [], []>} : vector<1x8xf32>, vector<8x8xf32>, vector<1x8xf32> -> vector<1x8xf32>
    %55 = vector.broadcast %54 : vector<1x8xf32> to vector<32x8xf32>
    %56 = arith.subf %50, %55 : vector<32x8xf32>
    %57 = arith.mulf %56, %56 : vector<32x8xf32>
    %cst_59 = arith.constant dense<0.000000e+00> : vector<8xf32>
    %58 = vector.multi_reduction <add>, %57, %cst_59 [0] : vector<32x8xf32> to vector<8xf32>
    %59 = vector.shape_cast %58 : vector<8xf32> to vector<1x8xf32>
    %c0_60 = arith.constant 0 : index
    %c0_61 = arith.constant 0 : index
    %60 = vector.load %arg12[%c0_60, %c0_61] : memref<8x8xf32, #tpu.memory_space<vmem>>, vector<8x8xf32>
    %cst_62 = arith.constant dense<0.000000e+00> : vector<1x8xf32>
    %61 = tpu.matmul %59, %60, %cst_62 {dimension_numbers = #tpu.dot_dimension_numbers<[1], [0], [0], [1], [0, 0, 1, 1], [], []>} : vector<1x8xf32>, vector<8x8xf32>, vector<1x8xf32> -> vector<1x8xf32>
    %cst_63 = arith.constant 9.99999974E-6 : f32
    %62 = vector.broadcast %cst_63 : f32 to vector<1x8xf32>
    %63 = arith.addf %61, %62 : vector<1x8xf32>
    %64 = math.rsqrt %63 : vector<1x8xf32>
    %65 = vector.broadcast %64 : vector<1x8xf32> to vector<32x8xf32>
    %66 = arith.mulf %56, %65 : vector<32x8xf32>
    %c0_64 = arith.constant 0 : index
    %c0_65 = arith.constant 0 : index
    %67 = vector.load %arg10[%c0_64, %c0_65] : memref<1x8xf32, #tpu.memory_space<vmem>>, vector<1x8xf32>
    %68 = vector.broadcast %67 : vector<1x8xf32> to vector<32x8xf32>
    %69 = arith.mulf %66, %68 : vector<32x8xf32>
    %c0_66 = arith.constant 0 : index
    %c0_67 = arith.constant 0 : index
    %70 = vector.load %arg11[%c0_66, %c0_67] : memref<1x8xf32, #tpu.memory_space<vmem>>, vector<1x8xf32>
    %71 = vector.broadcast %70 : vector<1x8xf32> to vector<32x8xf32>
    %72 = arith.addf %69, %71 : vector<32x8xf32>
    %73 = arith.negf %72 : vector<32x8xf32>
    %74 = math.exp %73 : vector<32x8xf32>
    %cst_68 = arith.constant 1.000000e+00 : f32
    %75 = vector.broadcast %cst_68 : f32 to vector<32x8xf32>
    %76 = arith.addf %75, %74 : vector<32x8xf32>
    %77 = arith.divf %75, %76 : vector<32x8xf32>
    %78 = arith.mulf %72, %77 : vector<32x8xf32>
    %79 = arith.index_cast %arg0 : i32 to index
    %c0_69 = arith.constant 0 : index
    %80 = vector.load %arg4[%79, %c0_69] : memref<2x8xf32, #tpu.memory_space<vmem>>, vector<1x8xf32>
    %81 = arith.index_cast %arg0 : i32 to index
    %c0_70 = arith.constant 0 : index
    %82 = vector.load %arg5[%81, %c0_70] : memref<2x8xf32, #tpu.memory_space<vmem>>, vector<1x8xf32>
    %83 = vector.broadcast %80 : vector<1x8xf32> to vector<32x8xf32>
    %84 = arith.mulf %78, %83 : vector<32x8xf32>
    %85 = vector.broadcast %82 : vector<1x8xf32> to vector<32x8xf32>
    %86 = arith.addf %84, %85 : vector<32x8xf32>
    %87 = arith.negf %86 : vector<32x8xf32>
    %88 = math.exp %87 : vector<32x8xf32>
    %cst_71 = arith.constant 1.000000e+00 : f32
    %89 = vector.broadcast %cst_71 : f32 to vector<32x8xf32>
    %90 = arith.addf %89, %88 : vector<32x8xf32>
    %91 = arith.divf %89, %90 : vector<32x8xf32>
    %92 = arith.mulf %86, %91 : vector<32x8xf32>
    %c8_72 = arith.constant 8 : index
    %c0_73 = arith.constant 0 : index
    %93 = vector.load %arg20[%c8_72, %c0_73] : memref<48x20xf32, #tpu.memory_space<vmem>>, vector<32x8xf32>
    tpu.vector_store %arg20[%c8_72, %c0_73], %92 {strides = array<i32>} : memref<48x20xf32, #tpu.memory_space<vmem>>, vector<32x8xf32>,
    %cst_74 = arith.constant 0.000000e+00 : f32
    %94 = vector.broadcast %cst_74 : f32 to vector<32x8xf32>
    %c7_75 = arith.constant 7 : index
    %c0_76 = arith.constant 0 : index
    %95 = vector.load %arg20[%c7_75, %c0_76] : memref<48x20xf32, #tpu.memory_space<vmem>>, vector<32x8xf32>
    %c0_77 = arith.constant 0 : index
    %c0_78 = arith.constant 0 : index
    %c0_79 = arith.constant 0 : index
    %96 = vector.load %arg13[%c0_77, %c0_78, %c0_79] : memref<3x8x8xf32, #tpu.memory_space<vmem>>, vector<1x8x8xf32>
    %97 = vector.shape_cast %96 : vector<1x8x8xf32> to vector<8x8xf32>
    %cst_80 = arith.constant dense<0.000000e+00> : vector<32x8xf32>
    %98 = tpu.matmul %95, %97, %cst_80 {dimension_numbers = #tpu.dot_dimension_numbers<[1], [0], [0], [1], [0, 0, 1, 1], [], []>} : vector<32x8xf32>, vector<8x8xf32>, vector<32x8xf32> -> vector<32x8xf32>
    %99 = arith.addf %94, %98 : vector<32x8xf32>
    %c8_81 = arith.constant 8 : index
    %c0_82 = arith.constant 0 : index
    %100 = vector.load %arg20[%c8_81, %c0_82] : memref<48x20xf32, #tpu.memory_space<vmem>>, vector<32x8xf32>
    %c1_83 = arith.constant 1 : index
    %c0_84 = arith.constant 0 : index
    %c0_85 = arith.constant 0 : index
    %101 = vector.load %arg13[%c1_83, %c0_84, %c0_85] : memref<3x8x8xf32, #tpu.memory_space<vmem>>, vector<1x8x8xf32>
    %102 = vector.shape_cast %101 : vector<1x8x8xf32> to vector<8x8xf32>
    %cst_86 = arith.constant dense<0.000000e+00> : vector<32x8xf32>
    %103 = tpu.matmul %100, %102, %cst_86 {dimension_numbers = #tpu.dot_dimension_numbers<[1], [0], [0], [1], [0, 0, 1, 1], [], []>} : vector<32x8xf32>, vector<8x8xf32>, vector<32x8xf32> -> vector<32x8xf32>
    %104 = arith.addf %99, %103 : vector<32x8xf32>
    %c9_87 = arith.constant 9 : index
    %c0_88 = arith.constant 0 : index
    %105 = vector.load %arg20[%c9_87, %c0_88] : memref<48x20xf32, #tpu.memory_space<vmem>>, vector<32x8xf32>
    %c2_89 = arith.constant 2 : index
    %c0_90 = arith.constant 0 : index
    %c0_91 = arith.constant 0 : index
    %106 = vector.load %arg13[%c2_89, %c0_90, %c0_91] : memref<3x8x8xf32, #tpu.memory_space<vmem>>, vector<1x8x8xf32>
    %107 = vector.shape_cast %106 : vector<1x8x8xf32> to vector<8x8xf32>
    %cst_92 = arith.constant dense<0.000000e+00> : vector<32x8xf32>
    %108 = tpu.matmul %105, %107, %cst_92 {dimension_numbers = #tpu.dot_dimension_numbers<[1], [0], [0], [1], [0, 0, 1, 1], [], []>} : vector<32x8xf32>, vector<8x8xf32>, vector<32x8xf32> -> vector<32x8xf32>
    %109 = arith.addf %104, %108 : vector<32x8xf32>
    %c0_93 = arith.constant 0 : index
    %c0_94 = arith.constant 0 : index
    %110 = vector.load %arg14[%c0_93, %c0_94] : memref<1x8xf32, #tpu.memory_space<vmem>>, vector<1x8xf32>
    %111 = vector.broadcast %110 : vector<1x8xf32> to vector<32x8xf32>
    %112 = arith.addf %109, %111 : vector<32x8xf32>
    %cst_95 = arith.constant dense<0.000000e+00> : vector<8xf32>
    %113 = vector.multi_reduction <add>, %112, %cst_95 [0] : vector<32x8xf32> to vector<8xf32>
    %114 = vector.shape_cast %113 : vector<8xf32> to vector<1x8xf32>
    %c0_96 = arith.constant 0 : index
    %c0_97 = arith.constant 0 : index
    %115 = vector.load %arg12[%c0_96, %c0_97] : memref<8x8xf32, #tpu.memory_space<vmem>>, vector<8x8xf32>
    %cst_98 = arith.constant dense<0.000000e+00> : vector<1x8xf32>
    %116 = tpu.matmul %114, %115, %cst_98 {dimension_numbers = #tpu.dot_dimension_numbers<[1], [0], [0], [1], [0, 0, 1, 1], [], []>} : vector<1x8xf32>, vector<8x8xf32>, vector<1x8xf32> -> vector<1x8xf32>
    %117 = vector.broadcast %116 : vector<1x8xf32> to vector<32x8xf32>
    %118 = arith.subf %112, %117 : vector<32x8xf32>
    %119 = arith.mulf %118, %118 : vector<32x8xf32>
    %cst_99 = arith.constant dense<0.000000e+00> : vector<8xf32>
    %120 = vector.multi_reduction <add>, %119, %cst_99 [0] : vector<32x8xf32> to vector<8xf32>
    %121 = vector.shape_cast %120 : vector<8xf32> to vector<1x8xf32>
    %c0_100 = arith.constant 0 : index
    %c0_101 = arith.constant 0 : index
    %122 = vector.load %arg12[%c0_100, %c0_101] : memref<8x8xf32, #tpu.memory_space<vmem>>, vector<8x8xf32>
    %cst_102 = arith.constant dense<0.000000e+00> : vector<1x8xf32>
    %123 = tpu.matmul %121, %122, %cst_102 {dimension_numbers = #tpu.dot_dimension_numbers<[1], [0], [0], [1], [0, 0, 1, 1], [], []>} : vector<1x8xf32>, vector<8x8xf32>, vector<1x8xf32> -> vector<1x8xf32>
    %cst_103 = arith.constant 9.99999974E-6 : f32
    %124 = vector.broadcast %cst_103 : f32 to vector<1x8xf32>
    %125 = arith.addf %123, %124 : vector<1x8xf32>
    %126 = math.rsqrt %125 : vector<1x8xf32>
    %127 = vector.broadcast %126 : vector<1x8xf32> to vector<32x8xf32>
    %128 = arith.mulf %118, %127 : vector<32x8xf32>
    %c0_104 = arith.constant 0 : index
    %c0_105 = arith.constant 0 : index
    %129 = vector.load %arg15[%c0_104, %c0_105] : memref<1x8xf32, #tpu.memory_space<vmem>>, vector<1x8xf32>
    %130 = vector.broadcast %129 : vector<1x8xf32> to vector<32x8xf32>
    %131 = arith.mulf %128, %130 : vector<32x8xf32>
    %c0_106 = arith.constant 0 : index
    %c0_107 = arith.constant 0 : index
    %132 = vector.load %arg16[%c0_106, %c0_107] : memref<1x8xf32, #tpu.memory_space<vmem>>, vector<1x8xf32>
    %133 = vector.broadcast %132 : vector<1x8xf32> to vector<32x8xf32>
    %134 = arith.addf %131, %133 : vector<32x8xf32>
    %135 = arith.negf %134 : vector<32x8xf32>
    %136 = math.exp %135 : vector<32x8xf32>
    %cst_108 = arith.constant 1.000000e+00 : f32
    %137 = vector.broadcast %cst_108 : f32 to vector<32x8xf32>
    %138 = arith.addf %137, %136 : vector<32x8xf32>
    %139 = arith.divf %137, %138 : vector<32x8xf32>
    %140 = arith.mulf %134, %139 : vector<32x8xf32>
    %c0_109 = arith.constant 0 : index
    %c0_110 = arith.constant 0 : index
    %141 = vector.load %arg17[%c0_109, %c0_110] : memref<8x8xf32, #tpu.memory_space<vmem>>, vector<8x8xf32>
    %cst_111 = arith.constant dense<0.000000e+00> : vector<32x8xf32>
    %142 = tpu.matmul %24, %141, %cst_111 {dimension_numbers = #tpu.dot_dimension_numbers<[1], [0], [0], [1], [0, 0, 1, 1], [], []>} : vector<32x8xf32>, vector<8x8xf32>, vector<32x8xf32> -> vector<32x8xf32>
    %143 = arith.addf %140, %142 : vector<32x8xf32>
    %c0_112 = arith.constant 0 : index
    %c0_113 = arith.constant 0 : index
    %144 = vector.load %arg18[%c0_112, %c0_113] : memref<1x8xf32, #tpu.memory_space<vmem>>, vector<1x8xf32>
    %145 = vector.broadcast %144 : vector<1x8xf32> to vector<32x8xf32>
    %146 = arith.addf %143, %145 : vector<32x8xf32>
    %c0_114 = arith.constant 0 : index
    %c0_115 = arith.constant 0 : index
    %c0_116 = arith.constant 0 : index
    %147 = vector.load %arg19[%c0_114, %c0_115, %c0_116] : memref<1x32x8xf32, #tpu.memory_space<vmem>>, vector<1x32x8xf32>
    %148 = vector.shape_cast %147 : vector<1x32x8xf32> to vector<32x8xf32>
    %149 = vector.shape_cast %146 : vector<32x8xf32> to vector<1x32x8xf32>
    tpu.vector_store %arg19[%c0_114, %c0_115, %c0_116], %149 {strides = array<i32>} : memref<1x32x8xf32, #tpu.memory_space<vmem>>, vector<1x32x8xf32>,
    return
  }
  func.func @transform_0(%arg0: i32) -> (i32, i32, i32) {
    %c0_i32 = arith.constant 0 : i32
    %c0_i32_0 = arith.constant 0 : i32
    %c0_i32_1 = arith.constant 0 : i32
    return %arg0, %c0_i32, %c0_i32_0 : i32, i32, i32
  }
  func.func @transform_1(%arg0: i32) -> (i32, i32, i32) {
    %c0_i32 = arith.constant 0 : i32
    %c0_i32_0 = arith.constant 0 : i32
    %c0_i32_1 = arith.constant 0 : i32
    return %arg0, %c0_i32, %c0_i32_0 : i32, i32, i32
  }
  func.func @transform_2(%arg0: i32) -> (i32, i32, i32) {
    %c0_i32 = arith.constant 0 : i32
    %c0_i32_0 = arith.constant 0 : i32
    %c0_i32_1 = arith.constant 0 : i32
    return %arg0, %c0_i32, %c0_i32_0 : i32, i32, i32
  }
  func.func @transform_3(%arg0: i32) -> (i32, i32) {
    %c0_i32 = arith.constant 0 : i32
    %c0_i32_0 = arith.constant 0 : i32
    %c0_i32_1 = arith.constant 0 : i32
    return %c0_i32, %c0_i32_0 : i32, i32
  }
  func.func @transform_4(%arg0: i32) -> (i32, i32) {
    %c0_i32 = arith.constant 0 : i32
    %c0_i32_0 = arith.constant 0 : i32
    %c0_i32_1 = arith.constant 0 : i32
    return %c0_i32, %c0_i32_0 : i32, i32
  }
  func.func @transform_5(%arg0: i32) -> (i32, i32, i32) {
    %c0_i32 = arith.constant 0 : i32
    %c0_i32_0 = arith.constant 0 : i32
    %c0_i32_1 = arith.constant 0 : i32
    %c0_i32_2 = arith.constant 0 : i32
    return %c0_i32, %c0_i32_0, %c0_i32_1 : i32, i32, i32
  }
  func.func @transform_6(%arg0: i32) -> (i32, i32) {
    %c0_i32 = arith.constant 0 : i32
    %c0_i32_0 = arith.constant 0 : i32
    %c0_i32_1 = arith.constant 0 : i32
    return %c0_i32, %c0_i32_0 : i32, i32
  }
  func.func @transform_7(%arg0: i32) -> (i32, i32, i32) {
    %c0_i32 = arith.constant 0 : i32
    %c0_i32_0 = arith.constant 0 : i32
    %c0_i32_1 = arith.constant 0 : i32
    %c0_i32_2 = arith.constant 0 : i32
    return %c0_i32, %c0_i32_0, %c0_i32_1 : i32, i32, i32
  }
  func.func @transform_8(%arg0: i32) -> (i32, i32) {
    %c0_i32 = arith.constant 0 : i32
    %c0_i32_0 = arith.constant 0 : i32
    %c0_i32_1 = arith.constant 0 : i32
    return %c0_i32, %c0_i32_0 : i32, i32
  }
  func.func @transform_9(%arg0: i32) -> (i32, i32) {
    %c0_i32 = arith.constant 0 : i32
    %c0_i32_0 = arith.constant 0 : i32
    %c0_i32_1 = arith.constant 0 : i32
    return %c0_i32, %c0_i32_0 : i32, i32
  }
  func.func @transform_10(%arg0: i32) -> (i32, i32) {
    %c0_i32 = arith.constant 0 : i32
    %c0_i32_0 = arith.constant 0 : i32
    %c0_i32_1 = arith.constant 0 : i32
    return %c0_i32, %c0_i32_0 : i32, i32
  }
  func.func @transform_11(%arg0: i32) -> (i32, i32) {
    %c0_i32 = arith.constant 0 : i32
    %c0_i32_0 = arith.constant 0 : i32
    %c0_i32_1 = arith.constant 0 : i32
    return %c0_i32, %c0_i32_0 : i32, i32
  }
  func.func @transform_12(%arg0: i32) -> (i32, i32, i32) {
    %c0_i32 = arith.constant 0 : i32
    %c0_i32_0 = arith.constant 0 : i32
    %c0_i32_1 = arith.constant 0 : i32
    %c0_i32_2 = arith.constant 0 : i32
    return %c0_i32, %c0_i32_0, %c0_i32_1 : i32, i32, i32
  }
  func.func @transform_13(%arg0: i32) -> (i32, i32) {
    %c0_i32 = arith.constant 0 : i32
    %c0_i32_0 = arith.constant 0 : i32
    %c0_i32_1 = arith.constant 0 : i32
    return %c0_i32, %c0_i32_0 : i32, i32
  }
  func.func @transform_14(%arg0: i32) -> (i32, i32) {
    %c0_i32 = arith.constant 0 : i32
    %c0_i32_0 = arith.constant 0 : i32
    %c0_i32_1 = arith.constant 0 : i32
    return %c0_i32, %c0_i32_0 : i32, i32
  }
  func.func @transform_15(%arg0: i32) -> (i32, i32) {
    %c0_i32 = arith.constant 0 : i32
    %c0_i32_0 = arith.constant 0 : i32
    %c0_i32_1 = arith.constant 0 : i32
    return %c0_i32, %c0_i32_0 : i32, i32
  }
  func.func @transform_16(%arg0: i32) -> (i32, i32) {
    %c0_i32 = arith.constant 0 : i32
    %c0_i32_0 = arith.constant 0 : i32
    %c0_i32_1 = arith.constant 0 : i32
    return %c0_i32, %c0_i32_0 : i32, i32
  }
  func.func @transform_17(%arg0: i32) -> (i32, i32) {
    %c0_i32 = arith.constant 0 : i32
    %c0_i32_0 = arith.constant 0 : i32
    %c0_i32_1 = arith.constant 0 : i32
    return %c0_i32, %c0_i32_0 : i32, i32
  }
  func.func @transform_18(%arg0: i32) -> (i32, i32, i32) {
    %c0_i32 = arith.constant 0 : i32
    %c0_i32_0 = arith.constant 0 : i32
    %c0_i32_1 = arith.constant 0 : i32
    return %arg0, %c0_i32, %c0_i32_0 : i32, i32, i32
  }
}

</mosaic_0001>

<bundles_post_ra>
// kernel: decoder_block_1d.1
= control target key start
LH: loop header
LB: loop body
LE: loop exit
PB: predicated region body
PF: predicated region fallthrough
CT: control target
= control target key end

     0   :  { %s2046_s27 = smov 0   ;;  %s2399_s0 = inlined_call_operand.vmem [shape: f32[2,32,8], index: 0, kind: input, shape index: {}]   ;;  %s2400_s1 = inlined_call_operand.vmem [shape: f32[2,32,8], index: 1, kind: input, shape index: {}]   ;;  %s2401_s2 = inlined_call_operand.vmem [shape: f32[2,32,4], index: 2, kind: input, shape index: {}]   ;;  %s2402_s3 = inlined_call_operand.vmem [shape: f32[2,8], index: 3, kind: input, shape index: {}]   ;;  %s2403_s4 = inlined_call_operand.vmem [shape: f32[2,8], index: 4, kind: input, shape index: {}]   ;;  %s2404_s5 = inlined_call_operand.vmem [shape: f32[3,8,8], index: 5, kind: input, shape index: {}]   ;;  %s2405_s6 = inlined_call_operand.vmem [shape: f32[1,8], index: 6, kind: input, shape index: {}]   ;;  %s2406_s7 = inlined_call_operand.vmem [shape: f32[3,20,8], index: 7, kind: input, shape index: {}]   ;;  %s2407_s8 = inlined_call_operand.vmem [shape: f32[1,8], index: 8, kind: input, shape index: {}]   ;;  %s2408_s9 = inlined_call_operand.vmem [shape: f32[1,8], index: 9, kind: input, shape index: {}]   ;;  %s2409_s10 = inlined_call_operand.vmem [shape: f32[1,8], index: 10, kind: input, shape index: {}]   ;;  %s2410_s11 = inlined_call_operand.vmem [shape: f32[8,8], index: 11, kind: input, shape index: {}]   ;;  %s2411_s12 = inlined_call_operand.vmem [shape: f32[3,8,8], index: 12, kind: input, shape index: {}]   ;;  %s2412_s13 = inlined_call_operand.vmem [shape: f32[1,8], index: 13, kind: input, shape index: {}]   ;;  %s2413_s14 = inlined_call_operand.vmem [shape: f32[1,8], index: 14, kind: input, shape index: {}]   ;;  %s2414_s15 = inlined_call_operand.vmem [shape: f32[1,8], index: 15, kind: input, shape index: {}]   ;;  %s2415_s16 = inlined_call_operand.vmem [shape: f32[8,8], index: 16, kind: input, shape index: {}]   ;;  %s2416_s17 = inlined_call_operand.vmem [shape: f32[1,8], index: 17, kind: input, shape index: {}]   ;;  %s2417_s18 = inlined_call_operand.vmem [shape: f32[2,32,8], index: 18, kind: output, shape index: {}]  }
   0x1   :  { %2418 = sst [smem:[#allocation3_spill]] %s2399_s0 }
   0x2   :  { %2419 = sst [smem:[#allocation4_spill]] %s2400_s1 }
   0x3   :  { %2420 = sst [smem:[#allocation5_spill]] %s2401_s2 }
   0x4 LB: > { %s2052_s28 = sadd.s32 4294967295, %s1946_s27   ;;  %p1781_p0 = scmp.ge.s32.totalorder %s1946_s27, 1  ;;  %s1946_s27 = sphi %s2046_s27, %s28_s27  }
   0x5   : > { %p532_p1 = scmp.lt.s32.totalorder %s1946_s27, 3 }
   0x7   : > { %p533_p2 = pnand %p1781_p0, %p532_p1 }
   0x8   : > { %p596_p3 = scmp.lt.s32.totalorder (!%p533_p2), %s2052_s28, 1  ;;  %s2421_s24 = sld [smem:[#allocation3_spill]] (!%p533_p2) }
   0x9   : > { %536 = sbr.rel (%p533_p2) target bundleno = 1269 (0x4f5), region = 92  ;;  %s2422_s30 = sld [smem:[#allocation4_spill]] (!%p533_p2) }
   0xa   : > { %s1949_s19 = smov (!%p533_p2), 8   ;;  %s1950_s23 = smov (!%p533_p2), 16  }
   0xb   : > { %s1195_s26 = scalar_lea.vmem (!%p533_p2), %s2402_s3, %s2052_s28 }
   0xe   : > { %v1790_v0 = vld [vmem:[%s2404_s5 + $0x8] sm:$0xff]  ;;  %v632_v1 = vld [vmem:[%s2404_s5] sm:$0xff]  ;;  %v1799_v2 = vld [vmem:[%s2404_s5 + $0x10] sm:$0xff]  ;;  %vm616_vm0 = vcmask 162816   ;;  %s597_s21 = scalar_select %p596_p3, %s2052_s28, 1  ;;  %v1948_v3 = vmov 0.0  }
   0xf   : > { %1865 = vmatpush.msra.mxu1 %v1790_v0  ;;  %754 = vmatpush.msra.mxu2 %v1799_v2  ;;  %617 = vst.msk [vmem:[#allocation2] sm:$0xff] %vm616_vm0, %v1948_v3  ;;  %vm623_vm1 = vcmask 64512   ;;  %vm861_vm2 = vcmask 1043456   ;;  %v1819_v28 = vld [vmem:[%s2406_s7 + $0x40] sm:$0xf]  ;;  %v1818_v31 = vld [vmem:[%s2406_s7 + $0x38] sm:$0xff] }
  0x10   : > { %666 = vmatpush.msra.mxu0 %v1790_v0  ;;  %618 = vst.msk [vmem:[#allocation2 + $0x28] sm:$0xff] %vm616_vm0, %v1948_v3  ;;  %1866 = vmatpush.msra.mxu3 %v1799_v2  ;;  %s2069_s22 = sshll.u32 %s597_s21, 5  ;;  %s2423_s21 = sld [smem:[#allocation5_spill]]  ;;  %v840_v29 = vld [vmem:[%s2406_s7 + $0x10] sm:$0xf]  ;;  %v1805_v32 = vld [vmem:[%s2406_s7 + $0x20] sm:$0xff] }
  0x11   : > { %707 = vmatpush.msrb.mxu1 %v632_v1  ;;  %s600_s25 = scalar_lea.vmem %s2421_s24, %s2069_s22  ;;  %s2079_s0 = scalar_lea.vmem %s2422_s30, %s2069_s22  ;;  %v1806_v30 = vld [vmem:[%s2406_s7 + $0x28] sm:$0xf]  ;;  %v1804_v34 = vld [vmem:[%s2406_s7 + $0x18] sm:$0xff]  ;;  %v838_v35 = vld [vmem:[%s2406_s7] sm:$0xff]  ;;  %vm804_vm3 = vcmask 130112   ;;  %vm829_vm4 = vcmask 162944  }
  0x12   : > { %v619_v4 = vld [vmem:[%s600_s25] sm:$0xff]  ;;  %v620_v5 = vld [vmem:[%s600_s25 + $0x8] sm:$0xff]  ;;  %v621_v6 = vld [vmem:[%s600_s25 + $0x10] sm:$0xff]  ;;  %1812 = vmatpush.msk.msrb.mxu0 %vm861_vm2, %v840_v29  ;;  %1807 = vmatpush.msk.msrb.mxu3 %vm861_vm2, %v1806_v30 }
  0x13   : > { %v622_v7 = vld [vmem:[%s600_s25 + $0x18] sm:$0xff]  ;;  %624 = vst.msk [vmem:[#allocation2 + $0x8] sm:$0xff] %vm623_vm1, %v619_v4  ;;  %v784_v8 = vld [vmem:[%s2079_s0] sm:$0xff]  ;;  %v785_v9 = vld [vmem:[%s2079_s0 + $0x8] sm:$0xff] }
  0x14   : > { %625 = vst.msk [vmem:[#allocation2 + $0x10] sm:$0xff] %vm623_vm1, %v620_v5  ;;  %792 = vrot.lane.b32.xlu0 %v784_v8, %s1949_s19  ;;  %794 = vrot.lane.b32.xlu1 %v785_v9, %s1949_s19  ;;  %v786_v16 = vld [vmem:[%s2079_s0 + $0x10] sm:$0xff]  ;;  %v787_v19 = vld [vmem:[%s2079_s0 + $0x18] sm:$0xff]  ;;  %s1197_s0 = scalar_lea.vmem %s2403_s4, %s2052_s28 }
  0x15   : > { %626 = vst.msk [vmem:[#allocation2 + $0x18] sm:$0xff] %vm623_vm1, %v621_v6  ;;  %796 = vrot.lane.b32.xlu2 %v786_v16, %s1949_s19  ;;  %v839_v33 = vld [vmem:[%s2406_s7 + $0x8] sm:$0xff]  ;;  %879 = vmatpush.msrb.mxu3 %v1805_v32  ;;  %v1817_v36 = vld [vmem:[%s2406_s7 + $0x30] sm:$0xff]  ;;  %v1878_v43 = vld [vmem:[%s2405_s6] ss:$0 sm:$0xff] }
  0x16   : > { %627 = vst.msk [vmem:[#allocation2 + $0x20] sm:$0xff] %vm623_vm1, %v622_v7  ;;  %s610_s2 = scalar_lea.vmem %s2423_s21, %s2069_s22  ;;  %923 = vmatpush.msrb.mxu0 %v839_v33  ;;  %v1879_v33 = vld [vmem:[%s2407_s8] ss:$0 sm:$0xff] }
  0x17   : > { %v809_v10 = vld [vmem:[%s610_s2] sm:$0xff]  ;;  %v810_v15 = vld [vmem:[%s610_s2 + $0x8] sm:$0xff]  ;;  %v812_v22 = vld [vmem:[%s610_s2 + $0x18] sm:$0xff]  ;;  %880 = vmatpush.msrb.mxu3 %v1804_v34 }
  0x18   : > { %v811_v23 = vld [vmem:[%s610_s2 + $0x10] sm:$0xff]  ;;  %924 = vmatpush.msrb.mxu0 %v838_v35 }
  0x1a   : > { %v633_v11 = vld [vmem:[#allocation2 + $0x8] sm:$0xff] }
  0x1b   : > { %v721_v12 = vld [vmem:[#allocation2 + $0x9] sm:$0xff]  ;;  %1791 = vmatmul.msk.f32.vlgmr.msra.gmra.mxu0 %vm623_vm1, %v633_v11 }
  0x1c   : > { %1800 = vmatmul.msk.f32.vlgmr.msra.gmra.mxu2 %vm623_vm1, %v721_v12  ;;  %817 = vrot.lane.b32.xlu0 %v809_v10, %s1950_s23  ;;  %v634_v17 = vld [vmem:[#allocation2 + $0x10] sm:$0xff]  ;;  %v628_v20 = vld [vmem:[#allocation2 + $0x7] sm:$0xff]  ;;  %v635_v24 = vld [vmem:[#allocation2 + $0x18] sm:$0xff] }
  0x1d   : > { %v636_v13 = vld [vmem:[#allocation2 + $0x20] sm:$0xff]  ;;  %819 = vrot.lane.b32.xlu1 %v810_v15, %s1950_s23  ;;  %v722_v18 = vld [vmem:[#allocation2 + $0x11] sm:$0xff]  ;;  %821 = vrot.lane.b32.xlu2 %v811_v23, %s1950_s23 }
  0x1e   : > { %v723_v14 = vld [vmem:[#allocation2 + $0x19] sm:$0xff]  ;;  %1794 = vmatmul.msk.f32.vlgmr.msra.gmra.mxu1 %vm623_vm1, %v636_v13  ;;  %v724_v21 = vld [vmem:[#allocation2 + $0x21] sm:$0xff]  ;;  %v629_v25 = vld [vmem:[#allocation2 + $0xf] sm:$0xff] }
  0x1f   : > { %1802 = vmatmul.msk.f32.vlgmr.msra.gmra.mxu3 %vm623_vm1, %v723_v14  ;;  %v630_v26 = vld [vmem:[#allocation2 + $0x17] sm:$0xff]  ;;  %v631_v27 = vld [vmem:[#allocation2 + $0x1f] sm:$0xff]  ;;  %1820 = vmatpush.msk.msra.mxu1 %vm861_vm2, %v1819_v28 }
  0x21   : > { %975 = vmatpush.msra.mxu1 %v1818_v31 }
  0x23   : > { %1792 = vmatmul.msk.f32.gmra.mxu0 %vm623_vm1, %v634_v17  ;;  %976 = vmatpush.msra.mxu1 %v1817_v36 }
  0x24   : > { %1801 = vmatmul.msk.f32.gmra.mxu2 %vm623_vm1, %v722_v18  ;;  %798 = vrot.lane.b32.xlu0 %v787_v19, %s1949_s19  ;;  %s615_s19 = scalar_lea.vmem %s2417_s18, %s2069_s22 }
  0x25   : > { %823 = vrot.lane.b32.xlu1 %v812_v22, %s1950_s23  ;;  %v1015_v22 = vld [vmem:[%s2410_s11] sm:$0xff] }
  0x26   : > { %1795 = vmatmul.msk.f32.vlgmr.msrb.gmra.mxu1 %vm623_vm1, %v628_v20  ;;  %1034 = vmatpush.msrb.mxu2 %v1015_v22 }
  0x27   : > { %1803 = vmatmul.msk.f32.gmra.mxu3 %vm623_vm1, %v724_v21  ;;  %1477 = vmatpush.msrb.mxu1 %v1015_v22 }
  0x28   : > { %1079 = vmatpush.msra.mxu3 %v1015_v22 }
  0x2b   : > { %1793 = vmatmul.msk.f32.gmra.mxu0 %vm623_vm1, %v635_v24 }
  0x2e   : > { %1796 = vmatmul.msk.f32.gmra.mxu1 %vm623_vm1, %v629_v25 }
  0x36   : > { %1797 = vmatmul.msk.f32.gmra.mxu1 %vm623_vm1, %v630_v26 }
  0x3e   : > { %1798 = vmatmul.msk.f32.gmra.mxu1 %vm623_vm1, %v631_v27 }
  0x6f   : > { %v797_v53 = vpop.permute.xlu2 %796 }
  0x77   : > { %v822_v0 = vpop.permute.xlu2 %821 }
  0x86   : > { %v793_v39 = vpop.permute.xlu0 %792  ;;  %v795_v45 = vpop.permute.xlu1 %794 }
  0x8e   : > { %v818_v48 = vpop.permute.xlu0 %817 }
  0x8f   : > { %v820_v55 = vpop.permute.xlu1 %819 }
  0x96   : > { %v799_v9 = vpop.permute.xlu0 %798 }
  0x97   : > { %v824_v10 = vpop.permute.xlu1 %823 }
  0x98   : > { %v668_v38 = vpop.f32.mrf.mxu0 }
  0x9b   : > { %v677_v37 = vpop.f32.mrf.mxu1 }
  0x9f   : > { %v756_v40 = vpop.f32.mrf.mxu2 }
  0xa0   : > { %v671_v46 = vpop.f32.mrf.mxu0 }
  0xa2   : > { %v762_v57 = vpop.f32.mrf.mxu3 }
  0xa3   : > { %v709_v41 = vpop.f32.mrf.mxu1 }
  0xa4   : > { %v710_v42 = vadd.f32 %v709_v41, %v668_v38 }
  0xa6   : > { %v768_v44 = vadd.f32 %v756_v40, %v710_v42 }
  0xa7   : > { %v759_v50 = vpop.f32.mrf.mxu2 }
  0xa8   : > { %v2135_v47 = vadd.f32 %v1878_v43, %v768_v44  ;;  %v674_v56 = vpop.f32.mrf.mxu0 }
  0xaa   : > { %780 = vst.msk [vmem:[#allocation2 + $0x8] sm:$0xff] %vm623_vm1, %v2135_v47  ;;  %v765_v5 = vpop.f32.mrf.mxu3 }
  0xab   : > { %805 = vst.msk [vmem:[#allocation2 + $0x8] sm:$0xff] %vm804_vm3, %v793_v39  ;;  %v712_v49 = vpop.f32.mrf.mxu1 }
  0xac   : > { %830 = vst.msk [vmem:[#allocation2 + $0x8] sm:$0xff] %vm829_vm4, %v818_v48  ;;  %v713_v51 = vadd.f32 %v712_v49, %v671_v46 }
  0xae   : > { %v769_v52 = vadd.f32 %v759_v50, %v713_v51 }
  0xb0   : > { %v2141_v54 = vadd.f32 %v1878_v43, %v769_v52 }
  0xb2   : > { %781 = vst.msk [vmem:[#allocation2 + $0x10] sm:$0xff] %vm623_vm1, %v2141_v54 }
  0xb3   : > { %806 = vst.msk [vmem:[#allocation2 + $0x10] sm:$0xff] %vm804_vm3, %v795_v45  ;;  %v715_v58 = vpop.f32.mrf.mxu1  ;;  %v841_v59 = vld [vmem:[#allocation2 + $0x8] sm:$0xff] }
  0xb4   : > { %v834_v60 = vld [vmem:[#allocation2 + $0x7] sm:$0xff]  ;;  %831 = vst.msk [vmem:[#allocation2 + $0x10] sm:$0xff] %vm829_vm4, %v820_v55  ;;  %v716_v61 = vadd.f32 %v715_v58, %v674_v56  ;;  %1808 = vmatmul.msk.f32.vlgmr.msrb.gmra.mxu3 %vm616_vm0, %v841_v59 }
  0xb5   : > { %1813 = vmatmul.msk.f32.vlgmr.msrb.gmra.mxu0 %vm616_vm0, %v834_v60 }
  0xb6   : > { %v770_v62 = vadd.f32 %v762_v57, %v716_v61 }
  0xb8   : > { %v2149_v63 = vadd.f32 %v1878_v43, %v770_v62 }
  0xba   : > { %782 = vst.msk [vmem:[#allocation2 + $0x18] sm:$0xff] %vm623_vm1, %v2149_v63 }
  0xbb   : > { %807 = vst.msk [vmem:[#allocation2 + $0x18] sm:$0xff] %vm804_vm3, %v797_v53  ;;  %v718_v1 = vpop.f32.mrf.mxu1  ;;  %v842_v2 = vld [vmem:[#allocation2 + $0x10] sm:$0xff] }
  0xbc   : > { %v835_v3 = vld [vmem:[#allocation2 + $0xf] sm:$0xff]  ;;  %832 = vst.msk [vmem:[#allocation2 + $0x18] sm:$0xff] %vm829_vm4, %v822_v0  ;;  %v719_v6 = vadd.f32 %v718_v1, %v677_v37  ;;  %1809 = vmatmul.msk.f32.gmra.mxu3 %vm616_vm0, %v842_v2 }
  0xbd   : > { %v938_v4 = vld [vmem:[#allocation2 + $0x9] sm:$0xff]  ;;  %1814 = vmatmul.msk.f32.gmra.mxu0 %vm616_vm0, %v835_v3 }
  0xbe   : > { %1821 = vmatmul.msk.f32.vlgmr.msra.gmra.mxu1 %vm616_vm0, %v938_v4  ;;  %v771_v7 = vadd.f32 %v765_v5, %v719_v6 }
  0xbf   : > { %1522 = vmatpush.msra.mxu1 %v1015_v22 }
  0xc0   : > { %v2158_v8 = vadd.f32 %v1878_v43, %v771_v7 }
  0xc2   : > { %783 = vst.msk [vmem:[#allocation2 + $0x20] sm:$0xff] %vm623_vm1, %v2158_v8 }
  0xc3   : > { %808 = vst.msk [vmem:[#allocation2 + $0x20] sm:$0xff] %vm804_vm3, %v799_v9  ;;  %v843_v11 = vld [vmem:[#allocation2 + $0x18] sm:$0xff] }
  0xc4   : > { %v836_v12 = vld [vmem:[#allocation2 + $0x17] sm:$0xff]  ;;  %833 = vst.msk [vmem:[#allocation2 + $0x20] sm:$0xff] %vm829_vm4, %v824_v10  ;;  %1810 = vmatmul.msk.f32.gmra.mxu3 %vm616_vm0, %v843_v11 }
  0xc5   : > { %v939_v13 = vld [vmem:[#allocation2 + $0x11] sm:$0xff]  ;;  %1815 = vmatmul.msk.f32.gmra.mxu0 %vm616_vm0, %v836_v12 }
  0xc6   : > { %1822 = vmatmul.msk.f32.gmra.mxu1 %vm616_vm0, %v939_v13 }
  0xcb   : > { %v844_v14 = vld [vmem:[#allocation2 + $0x20] sm:$0xff] }
  0xcc   : > { %v837_v15 = vld [vmem:[#allocation2 + $0x1f] sm:$0xff]  ;;  %1811 = vmatmul.msk.f32.gmra.mxu3 %vm616_vm0, %v844_v14 }
  0xcd   : > { %v940_v16 = vld [vmem:[#allocation2 + $0x19] sm:$0xff]  ;;  %1816 = vmatmul.msk.f32.gmra.mxu0 %vm616_vm0, %v837_v15  ;;  %v941_v17 = vld [vmem:[#allocation2 + $0x21] sm:$0xff] }
  0xce   : > { %1823 = vmatmul.msk.f32.gmra.mxu1 %vm616_vm0, %v940_v16 }
  0xd6   : > { %1824 = vmatmul.msk.f32.gmra.mxu1 %vm616_vm0, %v941_v17 }
 0x132   : > { %v926_v18 = vpop.f32.mrf.mxu0 }
 0x137   : > { %v882_v19 = vpop.f32.mrf.mxu3 }
 0x138   : > { %v927_v27 = vadd.f32 %v926_v18, %v882_v19 }
 0x13a   : > { %v929_v21 = vpop.f32.mrf.mxu0 }
 0x13b   : > { %v978_v20 = vpop.f32.mrf.mxu1 }
 0x13c   : > { %v990_v32 = vadd.f32 %v978_v20, %v927_v27 }
 0x13e   : > { %v998_v36 = vadd.f32 %v1879_v33, %v990_v32 }
 0x13f   : > { %v885_v23 = vpop.f32.mrf.mxu3 }
 0x140   : > { %v930_v25 = vadd.f32 %v929_v21, %v885_v23  ;;  %v1002_v43 = vsel %vm623_vm1, %v998_v36, 0.0 }
 0x142   : > { %v932_v26 = vpop.f32.mrf.mxu0 }
 0x143   : > { %v981_v24 = vpop.f32.mrf.mxu1 }
 0x144   : > { %v991_v30 = vadd.f32 %v981_v24, %v930_v25 }
 0x146   : > { %v999_v35 = vadd.f32 %v1879_v33, %v991_v30  ;;  %v1880_v30 = vld [vmem:[%s2408_s9] ss:$0 sm:$0xff] }
 0x147   : > { %v888_v28 = vpop.f32.mrf.mxu3 }
 0x148   : > { %v933_v29 = vadd.f32 %v932_v26, %v888_v28  ;;  %v1003_v41 = vsel %vm623_vm1, %v999_v35, 0.0 }
 0x149   : > { %v1004_v46 = vadd.f32 %v1003_v41, %v1002_v43 }
 0x14a   : > { %v935_v37 = vpop.f32.mrf.mxu0 }
 0x14b   : > { %v984_v31 = vpop.f32.mrf.mxu1 }
 0x14c   : > { %v992_v34 = vadd.f32 %v984_v31, %v933_v29 }
 0x14e   : > { %v1000_v38 = vadd.f32 %v1879_v33, %v992_v34 }
 0x14f   : > { %v891_v39 = vpop.f32.mrf.mxu3 }
 0x150   : > { %v936_v40 = vadd.f32 %v935_v37, %v891_v39  ;;  %v1005_v44 = vsel %vm623_vm1, %v1000_v38, 0.0 }
 0x151   : > { %v1006_v49 = vadd.f32 %v1005_v44, %v1004_v46 }
 0x153   : > { %v987_v42 = vpop.f32.mrf.mxu1 }
 0x154   : > { %v993_v45 = vadd.f32 %v987_v42, %v936_v40 }
 0x156   : > { %v1001_v48 = vadd.f32 %v1879_v33, %v993_v45 }
 0x158   : > { %v1007_v50 = vsel %vm623_vm1, %v1001_v48, 0.0 }
 0x159   : > { %v1008_v51 = vadd.f32 %v1007_v50, %v1006_v49 }
 0x15b   : > { %v1009_v52 = vrot.slane %v1008_v51, 4 }
 0x15d   : > { %v1010_v53 = vadd.f32 %v1009_v52, %v1008_v51 }
 0x15f   : > { %v1011_v55 = vrot.slane %v1010_v53, 2 }
 0x161   : > { %v1012_v56 = vadd.f32 %v1011_v55, %v1010_v53 }
 0x163   : > { %v1013_v57 = vrot.slane %v1012_v56, 1 }
 0x165   : > { %v1014_v58 = vadd.f32 %v1013_v57, %v1012_v56 }
 0x167   : > { %1825 = vmatmul.msk.f32.vlgmr.msrb.gmra.mxu2 %vm623_vm1, %v1014_v58 }
 0x1ea   : > { %v1036_v59 = vpop.f32.mrf.mxu2 }
 0x1eb   : > { %v1039_v60 = vperm.slane %v1036_v59, 0 }
 0x1ed   : > { %v1040_v61 = vsub.f32 %v998_v36, %v1039_v60  ;;  %v1041_v62 = vsub.f32 %v999_v35, %v1039_v60  ;;  %v1042_v0 = vsub.f32 %v1000_v38, %v1039_v60  ;;  %v1043_v1 = vsub.f32 %v1001_v48, %v1039_v60  ;;  %v1881_v35 = vld [vmem:[%s2409_s10] ss:$0 sm:$0xff] }
 0x1ef   : > { %v1044_v2 = vmul.f32 %v1040_v61, %v1040_v61  ;;  %v1045_v3 = vmul.f32 %v1041_v62, %v1041_v62  ;;  %v1046_v4 = vmul.f32 %v1042_v0, %v1042_v0  ;;  %v1047_v5 = vmul.f32 %v1043_v1, %v1043_v1 }
 0x1f1   : > { %v1048_v6 = vsel %vm623_vm1, %v1044_v2, 0.0  ;;  %v1049_v7 = vsel %vm623_vm1, %v1045_v3, 0.0  ;;  %v1051_v10 = vsel %vm623_vm1, %v1046_v4, 0.0  ;;  %v1053_v12 = vsel %vm623_vm1, %v1047_v5, 0.0 }
 0x1f2   : > { %v1050_v9 = vadd.f32 %v1049_v7, %v1048_v6 }
 0x1f4   : > { %v1052_v11 = vadd.f32 %v1051_v10, %v1050_v9 }
 0x1f6   : > { %v1054_v13 = vadd.f32 %v1053_v12, %v1052_v11 }
 0x1f8   : > { %v1055_v14 = vrot.slane %v1054_v13, 4 }
 0x1fa   : > { %v1056_v15 = vadd.f32 %v1055_v14, %v1054_v13 }
 0x1fc   : > { %v1057_v16 = vrot.slane %v1056_v15, 2 }
 0x1fe   : > { %v1058_v17 = vadd.f32 %v1057_v16, %v1056_v15 }
 0x200   : > { %v1059_v18 = vrot.slane %v1058_v17, 1 }
 0x202   : > { %v1060_v19 = vadd.f32 %v1059_v18, %v1058_v17 }
 0x204   : > { %1826 = vmatmul.msk.f32.vlgmr.msra.gmra.mxu3 %vm623_vm1, %v1060_v19 }
 0x287   : > { %v1081_v20 = vpop.f32.mrf.mxu3 }
 0x288   : > { %v1082_v21 = vadd.f32 1e-05, %v1081_v20 }
 0x28a   : > { %1888 = vrsqrt.f32 %v1082_v21  ;;  %vm1090_vm6 = vweird.f32 %v1082_v21 }
 0x290   : > { %v1889_v22 = vpop.eup %1888 }
 0x291   : > { %v1085_v23 = vmul.f32 %v1889_v22, %v1082_v21  ;;  %vm1091_vm5 = vweird.f32 %v1889_v22 }
 0x292   : > { %vm1092_vm7 = vmor %vm1090_vm6, %vm1091_vm5 }
 0x293   : > { %v1086_v24 = vmul.f32 %v1889_v22, %v1085_v23 }
 0x295   : > { %v1087_v25 = vmul.f32 0.5, %v1086_v24 }
 0x297   : > { %v1088_v26 = vsub.f32 1.5, %v1087_v25 }
 0x299   : > { %v1089_v27 = vmul.f32 %v1889_v22, %v1088_v26 }
 0x29b   : > { %v1093_v28 = vsel %vm1092_vm7, %v1889_v22, %v1089_v27 }
 0x29c   : > { %v1094_v29 = vperm.slane %v1093_v28, 0  ;;  %v1882_v28 = vld [vmem:[%s1195_s26] ss:$0 sm:$0xff] }
 0x29e   : > { %v1095_v31 = vmul.f32 %v1094_v29, %v1040_v61  ;;  %v1096_v32 = vmul.f32 %v1094_v29, %v1041_v62  ;;  %v1097_v33 = vmul.f32 %v1094_v29, %v1042_v0  ;;  %v1098_v34 = vmul.f32 %v1094_v29, %v1043_v1 }
 0x2a0   : > { %v1103_v36 = vmul.f32 %v1880_v30, %v1095_v31  ;;  %v1104_v37 = vmul.f32 %v1880_v30, %v1096_v32  ;;  %v1105_v38 = vmul.f32 %v1880_v30, %v1097_v33  ;;  %v1106_v39 = vmul.f32 %v1880_v30, %v1098_v34 }
 0x2a2   : > { %v2201_v40 = vadd.f32 %v1881_v35, %v1103_v36  ;;  %v2203_v41 = vadd.f32 %v1881_v35, %v1104_v37  ;;  %v2205_v42 = vadd.f32 %v1881_v35, %v1105_v38  ;;  %v2207_v43 = vadd.f32 %v1881_v35, %v1106_v39  ;;  %v1883_v36 = vld [vmem:[%s1197_s0] ss:$0 sm:$0xff] }
 0x2a4   : > { %v1827_v44 = vmul.f32 -1.442695, %v2201_v40  ;;  %v1828_v45 = vmul.f32 -1.442695, %v2203_v41  ;;  %v1829_v46 = vmul.f32 -1.442695, %v2205_v42 }
 0x2a5   : > { %v1830_v48 = vmul.f32 -1.442695, %v2207_v43 }
 0x2a6   : > { %1890 = vpow2.f32 %v1827_v44 }
 0x2a7   : > { %1892 = vpow2.f32 %v1828_v45 }
 0x2a8   : > { %1894 = vpow2.f32 %v1829_v46 }
 0x2a9   : > { %1896 = vpow2.f32 %v1830_v48 }
 0x2ac   : > { %v1891_v49 = vpop.eup %1890 }
 0x2ad   : > { %v1893_v50 = vpop.eup %1892  ;;  %v1127_v51 = vadd.f32 1.0, %v1891_v49 }
 0x2ae   : > { %v1895_v52 = vpop.eup %1894  ;;  %v1128_v53 = vadd.f32 1.0, %v1893_v50 }
 0x2af   : > { %v1897_v55 = vpop.eup %1896  ;;  %v1129_v56 = vadd.f32 1.0, %v1895_v52  ;;  %1898 = vrcp.f32 %v1127_v51  ;;  %v1140_v58 = vand.u32 2147483647, %v1127_v51  ;;  %v1142_v59 = vand.u32 2147483648, %v1127_v51 }
 0x2b0   : > { %v2213_v57 = vadd.f32 1.0, %v1897_v55  ;;  %1900 = vrcp.f32 %v1128_v53  ;;  %vm1136_vm8 = vweird.f32 %v1127_v51  ;;  %vm1151_vm9 = vweird.f32 %v1128_v53 }
 0x2b1   : > { %1902 = vrcp.f32 %v1129_v56  ;;  %v1155_v2 = vand.u32 2147483647, %v1128_v53  ;;  %v1157_v3 = vand.u32 2147483648, %v1128_v53  ;;  %vm2216_vm10 = vcmp.eq.f32.partialorder %v1140_v58, 8.507059e+37  ;;  %v1835_v58 = vld [vmem:[%s2411_s12 + $0x8] sm:$0xff] }
 0x2b2   : > { %1904 = vrcp.f32 %v2213_v57  ;;  %v1143_v6 = vor.u32 1.1754944e-38, %v1142_v59  ;;  %vm1166_vm11 = vweird.f32 %v1129_v56  ;;  %v1170_v11 = vand.u32 2147483647, %v1129_v56  ;;  %v1297_v59 = vld [vmem:[%s2411_s12] sm:$0xff]  ;;  %1331 = vmatpush.msra.mxu2 %v1835_v58 }
 0x2b3   : > { %v1172_v12 = vand.u32 2147483648, %v1129_v56  ;;  %vm2221_vm14 = vcmp.eq.f32.partialorder %v1155_v2, 8.507059e+37  ;;  %v1158_v18 = vor.u32 1.1754944e-38, %v1157_v3  ;;  %vm1181_vm2 = vweird.f32 %v2213_v57  ;;  %1372 = vmatpush.msrb.mxu3 %v1297_v59  ;;  %v1638_v58 = vld [vmem:[%s2415_s16] sm:$0xff] }
 0x2b4   : > { %v1185_v23 = vand.u32 2147483647, %v2213_v57  ;;  %v1187_v24 = vand.u32 2147483648, %v2213_v57  ;;  %vm1171_vm6 = vcmp.eq.f32.partialorder %v1170_v11, 8.507059e+37  ;;  %1666 = vmatpush.msrb.mxu2 %v1638_v58 }
 0x2b5   : > { %v1899_v60 = vpop.eup %1898  ;;  %v1173_v31 = vor.u32 1.1754944e-38, %v1172_v12 }
 0x2b6   : > { %v1901_v61 = vpop.eup %1900  ;;  %v1132_v62 = vmul.f32 %v1899_v60, %v1127_v51  ;;  %vm1137_vm12 = vweird.f32 %v1899_v60  ;;  %v1188_v38 = vor.u32 1.1754944e-38, %v1187_v24 }
 0x2b7   : > { %v1903_v0 = vpop.eup %1902  ;;  %v1147_v1 = vmul.f32 %v1901_v61, %v1128_v53  ;;  %vm1152_vm13 = vweird.f32 %v1901_v61  ;;  %vm1138_vm0 = vmor %vm1136_vm8, %vm1137_vm12  ;;  %vm1186_vm8 = vcmp.eq.f32.partialorder %v1185_v23, 8.507059e+37 }
 0x2b8   : > { %v1133_v4 = vsub.f32 1.0, %v1132_v62  ;;  %v1162_v7 = vmul.f32 %v1903_v0, %v1129_v56  ;;  %v1905_v9 = vpop.eup %1904  ;;  %vm1167_vm15 = vweird.f32 %v1903_v0  ;;  %vm1153_vm3 = vmor %vm1151_vm9, %vm1152_vm13 }
 0x2b9   : > { %v1148_v10 = vsub.f32 1.0, %v1147_v1  ;;  %v1177_v15 = vmul.f32 %v1905_v9, %v2213_v57  ;;  %vm1182_vm4 = vweird.f32 %v1905_v9  ;;  %vm1168_vm5 = vmor %vm1166_vm11, %vm1167_vm15 }
 0x2ba   : > { %v1134_v13 = vmul.f32 %v1899_v60, %v1133_v4  ;;  %v1163_v14 = vsub.f32 1.0, %v1162_v7  ;;  %vm1183_vm7 = vmor %vm1181_vm2, %vm1182_vm4 }
 0x2bb   : > { %v1149_v16 = vmul.f32 %v1901_v61, %v1148_v10  ;;  %v1178_v21 = vsub.f32 1.0, %v1177_v15 }
 0x2bc   : > { %v1135_v19 = vadd.f32 %v1899_v60, %v1134_v13  ;;  %v1164_v20 = vmul.f32 %v1903_v0, %v1163_v14 }
 0x2bd   : > { %v1150_v22 = vadd.f32 %v1901_v61, %v1149_v16  ;;  %v1179_v27 = vmul.f32 %v1905_v9, %v1178_v21 }
 0x2be   : > { %v1139_v25 = vsel %vm1138_vm0, %v1899_v60, %v1135_v19  ;;  %v1165_v26 = vadd.f32 %v1903_v0, %v1164_v20 }
 0x2bf   : > { %v1144_v29 = vsel %vm2216_vm10, %v1143_v6, %v1139_v25  ;;  %v1154_v30 = vsel %vm1153_vm3, %v1901_v61, %v1150_v22  ;;  %v1180_v34 = vadd.f32 %v1905_v9, %v1179_v27 }
 0x2c0   : > { %v1159_v32 = vsel %vm2221_vm14, %v1158_v18, %v1154_v30  ;;  %v1169_v33 = vsel %vm1168_vm5, %v1903_v0, %v1165_v26  ;;  %v1191_v35 = vmul.f32 %v1144_v29, %v2201_v40 }
 0x2c1   : > { %v1174_v37 = vsel %vm1171_vm6, %v1173_v31, %v1169_v33  ;;  %v1192_v39 = vmul.f32 %v1159_v32, %v2203_v41  ;;  %v1184_v44 = vsel %vm1183_vm7, %v1905_v9, %v1180_v34 }
 0x2c2   : > { %v1193_v45 = vmul.f32 %v1174_v37, %v2205_v42  ;;  %v1200_v46 = vmul.f32 %v1882_v28, %v1191_v35  ;;  %v1189_v48 = vsel %vm1186_vm8, %v1188_v38, %v1184_v44 }
 0x2c3   : > { %v1201_v49 = vmul.f32 %v1882_v28, %v1192_v39  ;;  %v1194_v40 = vmul.f32 %v1189_v48, %v2207_v43  ;;  %v1844_v43 = vld [vmem:[%s2411_s12 + $0x10] sm:$0xff] }
 0x2c4   : > { %v1202_v50 = vmul.f32 %v1882_v28, %v1193_v45  ;;  %v2252_v51 = vadd.f32 %v1883_v36, %v1200_v46  ;;  %1419 = vmatpush.msra.mxu0 %v1844_v43 }
 0x2c5   : > { %v2254_v52 = vadd.f32 %v1883_v36, %v1201_v49  ;;  %v1203_v53 = vmul.f32 %v1882_v28, %v1194_v40 }
 0x2c6   : > { %v2256_v55 = vadd.f32 %v1883_v36, %v1202_v50  ;;  %v1831_v56 = vmul.f32 -1.442695, %v2252_v51 }
 0x2c7   : > { %v1832_v41 = vmul.f32 -1.442695, %v2254_v52  ;;  %v2260_v57 = vadd.f32 %v1883_v36, %v1203_v53 }
 0x2c8   : > { %1906 = vpow2.f32 %v1831_v56  ;;  %v1833_v42 = vmul.f32 -1.442695, %v2256_v55 }
 0x2c9   : > { %1908 = vpow2.f32 %v1832_v41  ;;  %v1834_v60 = vmul.f32 -1.442695, %v2260_v57 }
 0x2ca   : > { %1910 = vpow2.f32 %v1833_v42 }
 0x2cb   : > { %1912 = vpow2.f32 %v1834_v60 }
 0x2ce   : > { %v1907_v61 = vpop.eup %1906 }
 0x2cf   : > { %v1909_v62 = vpop.eup %1908  ;;  %v1221_v0 = vadd.f32 1.0, %v1907_v61 }
 0x2d0   : > { %v1911_v1 = vpop.eup %1910  ;;  %v1222_v2 = vadd.f32 1.0, %v1909_v62 }
 0x2d1   : > { %v1223_v3 = vadd.f32 1.0, %v1911_v1  ;;  %1914 = vrcp.f32 %v1221_v0  ;;  %v1913_v4 = vpop.eup %1912  ;;  %v1234_v6 = vand.u32 2147483647, %v1221_v0  ;;  %v1236_v7 = vand.u32 2147483648, %v1221_v0 }
 0x2d2   : > { %1916 = vrcp.f32 %v1222_v2  ;;  %v1224_v5 = vadd.f32 1.0, %v1913_v4  ;;  %v1249_v10 = vand.u32 2147483647, %v1222_v2  ;;  %vm1230_vm9 = vweird.f32 %v1221_v0 }
 0x2d3   : > { %1918 = vrcp.f32 %v1223_v3  ;;  %vm1245_vm10 = vweird.f32 %v1222_v2  ;;  %v1251_v15 = vand.u32 2147483648, %v1222_v2  ;;  %vm2273_vm11 = vcmp.eq.f32.partialorder %v1234_v6, 8.507059e+37 }
 0x2d4   : > { %1920 = vrcp.f32 %v1224_v5  ;;  %v1237_v18 = vor.u32 1.1754944e-38, %v1236_v7  ;;  %vm2277_vm12 = vcmp.eq.f32.partialorder %v1249_v10, 8.507059e+37  ;;  %vm1260_vm13 = vweird.f32 %v1223_v3 }
 0x2d5   : > { %v1264_v23 = vand.u32 2147483647, %v1223_v3  ;;  %v1252_v28 = vor.u32 1.1754944e-38, %v1251_v15  ;;  %v1266_v29 = vand.u32 2147483648, %v1223_v3  ;;  %vm1275_vm3 = vweird.f32 %v1224_v5 }
 0x2d6   : > { %v1279_v34 = vand.u32 2147483647, %v1224_v5  ;;  %v1281_v35 = vand.u32 2147483648, %v1224_v5 }
 0x2d7   : > { %v1915_v9 = vpop.eup %1914  ;;  %vm1265_vm7 = vcmp.eq.f32.partialorder %v1264_v23, 8.507059e+37  ;;  %v1267_v45 = vor.u32 1.1754944e-38, %v1266_v29 }
 0x2d8   : > { %v1917_v11 = vpop.eup %1916  ;;  %v1226_v12 = vmul.f32 %v1915_v9, %v1221_v0  ;;  %vm1231_vm14 = vweird.f32 %v1915_v9  ;;  %v1282_v53 = vor.u32 1.1754944e-38, %v1281_v35 }
 0x2d9   : > { %v1919_v13 = vpop.eup %1918  ;;  %v1241_v14 = vmul.f32 %v1917_v11, %v1222_v2  ;;  %vm1246_vm15 = vweird.f32 %v1917_v11  ;;  %vm1232_vm2 = vmor %vm1230_vm9, %vm1231_vm14  ;;  %vm1280_vm9 = vcmp.eq.f32.partialorder %v1279_v34, 8.507059e+37 }
 0x2da   : > { %v1227_v16 = vsub.f32 1.0, %v1226_v12  ;;  %v1256_v19 = vmul.f32 %v1919_v13, %v1223_v3  ;;  %v1921_v20 = vpop.eup %1920  ;;  %vm1261_vm0 = vweird.f32 %v1919_v13  ;;  %vm1247_vm4 = vmor %vm1245_vm10, %vm1246_vm15 }
 0x2db   : > { %v1242_v21 = vsub.f32 1.0, %v1241_v14  ;;  %v1271_v26 = vmul.f32 %v1921_v20, %v1224_v5  ;;  %vm1276_vm5 = vweird.f32 %v1921_v20  ;;  %vm1262_vm6 = vmor %vm1260_vm13, %vm1261_vm0 }
 0x2dc   : > { %v1228_v24 = vmul.f32 %v1915_v9, %v1227_v16  ;;  %v1257_v25 = vsub.f32 1.0, %v1256_v19  ;;  %vm1277_vm8 = vmor %vm1275_vm3, %vm1276_vm5 }
 0x2dd   : > { %v1243_v27 = vmul.f32 %v1917_v11, %v1242_v21  ;;  %v1272_v32 = vsub.f32 1.0, %v1271_v26 }
 0x2de   : > { %v1229_v30 = vadd.f32 %v1915_v9, %v1228_v24  ;;  %v1258_v31 = vmul.f32 %v1919_v13, %v1257_v25 }
 0x2df   : > { %v1244_v33 = vadd.f32 %v1917_v11, %v1243_v27  ;;  %v1273_v38 = vmul.f32 %v1921_v20, %v1272_v32 }
 0x2e0   : > { %v1233_v36 = vsel %vm1232_vm2, %v1915_v9, %v1229_v30  ;;  %v1259_v37 = vadd.f32 %v1919_v13, %v1258_v31 }
 0x2e1   : > { %v1238_v39 = vsel %vm2273_vm11, %v1237_v18, %v1233_v36  ;;  %v1248_v44 = vsel %vm1247_vm4, %v1917_v11, %v1244_v33  ;;  %v1274_v49 = vadd.f32 %v1921_v20, %v1273_v38 }
 0x2e2   : > { %v1253_v46 = vsel %vm2277_vm12, %v1252_v28, %v1248_v44  ;;  %v1263_v48 = vsel %vm1262_vm6, %v1919_v13, %v1259_v37  ;;  %v1285_v40 = vmul.f32 %v1238_v39, %v2252_v51 }
 0x2e3   : > { %v1268_v50 = vsel %vm1265_vm7, %v1267_v45, %v1263_v48  ;;  %v1286_v56 = vmul.f32 %v1253_v46, %v2254_v52  ;;  %v1278_v41 = vsel %vm1277_vm8, %v1921_v20, %v1274_v49 }
 0x2e4   : > { %v1287_v42 = vmul.f32 %v1268_v50, %v2256_v55  ;;  %1289 = vst.msk [vmem:[#allocation2 + $0x8] sm:$0xff] %vm623_vm1, %v1285_v40  ;;  %v1283_v43 = vsel %vm1280_vm9, %v1282_v53, %v1278_v41 }
 0x2e5   : > { %1290 = vst.msk [vmem:[#allocation2 + $0x10] sm:$0xff] %vm623_vm1, %v1286_v56  ;;  %v1288_v51 = vmul.f32 %v1283_v43, %v2260_v57 }
 0x2e6   : > { %1291 = vst.msk [vmem:[#allocation2 + $0x18] sm:$0xff] %vm623_vm1, %v1287_v42 }
 0x2e7   : > { %1292 = vst.msk [vmem:[#allocation2 + $0x20] sm:$0xff] %vm623_vm1, %v1288_v51 }
 0x2eb   : > { %v1298_v52 = vld [vmem:[#allocation2 + $0x8] sm:$0xff] }
 0x2ec   : > { %v1293_v59 = vld [vmem:[#allocation2 + $0x7] sm:$0xff]  ;;  %1836 = vmatmul.msk.f32.vlgmr.msra.gmra.mxu2 %vm623_vm1, %v1298_v52  ;;  %v1299_v60 = vld [vmem:[#allocation2 + $0x10] sm:$0xff] }
 0x2ed   : > { %1840 = vmatmul.msk.f32.vlgmr.msrb.gmra.mxu3 %vm623_vm1, %v1293_v59  ;;  %v1386_v55 = vld [vmem:[#allocation2 + $0x9] sm:$0xff]  ;;  %v1387_v57 = vld [vmem:[#allocation2 + $0x11] sm:$0xff] }
 0x2ee   : > { %1845 = vmatmul.msk.f32.vlgmr.msra.gmra.mxu0 %vm623_vm1, %v1386_v55  ;;  %v1294_v61 = vld [vmem:[#allocation2 + $0xf] sm:$0xff]  ;;  %v1300_v62 = vld [vmem:[#allocation2 + $0x18] sm:$0xff]  ;;  %v1301_v2 = vld [vmem:[#allocation2 + $0x20] sm:$0xff] }
 0x2ef   : > { %v1295_v0 = vld [vmem:[#allocation2 + $0x17] sm:$0xff]  ;;  %v1296_v3 = vld [vmem:[#allocation2 + $0x1f] sm:$0xff] }
 0x2f0   : > { %v1388_v1 = vld [vmem:[#allocation2 + $0x19] sm:$0xff]  ;;  %v1389_v4 = vld [vmem:[#allocation2 + $0x21] sm:$0xff] }
 0x2f4   : > { %1837 = vmatmul.msk.f32.gmra.mxu2 %vm623_vm1, %v1299_v60 }
 0x2f5   : > { %1841 = vmatmul.msk.f32.gmra.mxu3 %vm623_vm1, %v1294_v61 }
 0x2f6   : > { %1846 = vmatmul.msk.f32.gmra.mxu0 %vm623_vm1, %v1387_v57 }
 0x2fc   : > { %1838 = vmatmul.msk.f32.gmra.mxu2 %vm623_vm1, %v1300_v62 }
 0x2fd   : > { %1842 = vmatmul.msk.f32.gmra.mxu3 %vm623_vm1, %v1295_v0 }
 0x2fe   : > { %1847 = vmatmul.msk.f32.gmra.mxu0 %vm623_vm1, %v1388_v1 }
 0x304   : > { %1839 = vmatmul.msk.f32.gmra.mxu2 %vm623_vm1, %v1301_v2 }
 0x305   : > { %1843 = vmatmul.msk.f32.gmra.mxu3 %vm623_vm1, %v1296_v3 }
 0x306   : > { %1848 = vmatmul.msk.f32.gmra.mxu0 %vm623_vm1, %v1389_v4 }
 0x30c   : > { %1855 = vmatmul.msk.f32.vlgmr.msrb.gmra.mxu2 %vm623_vm1, %v2135_v47 }
 0x314   : > { %1856 = vmatmul.msk.f32.gmra.mxu2 %vm623_vm1, %v2141_v54 }
 0x31c   : > { %1857 = vmatmul.msk.f32.gmra.mxu2 %vm623_vm1, %v2149_v63  ;;  %v1884_v63 = vld [vmem:[%s2412_s13] ss:$0 sm:$0xff] }
 0x324   : > { %1858 = vmatmul.msk.f32.gmra.mxu2 %vm623_vm1, %v2158_v8 }
 0x36b   : > { %v1421_v5 = vpop.f32.mrf.mxu0 }
 0x36f   : > { %v1333_v6 = vpop.f32.mrf.mxu2 }
 0x370   : > { %v1374_v7 = vpop.f32.mrf.mxu3 }
 0x371   : > { %v1375_v13 = vadd.f32 %v1374_v7, %v1333_v6 }
 0x373   : > { %v1424_v9 = vpop.f32.mrf.mxu0  ;;  %v1433_v54 = vadd.f32 %v1421_v5, %v1375_v13  ;;  %v1885_v13 = vld [vmem:[%s2413_s14] ss:$0 sm:$0xff] }
 0x375   : > { %v1441_v19 = vadd.f32 %v1884_v63, %v1433_v54 }
 0x377   : > { %v1336_v10 = vpop.f32.mrf.mxu2  ;;  %v1445_v26 = vsel %vm623_vm1, %v1441_v19, 0.0 }
 0x378   : > { %v1377_v11 = vpop.f32.mrf.mxu3 }
 0x379   : > { %v1378_v12 = vadd.f32 %v1377_v11, %v1336_v10 }
 0x37b   : > { %v1427_v14 = vpop.f32.mrf.mxu0  ;;  %v1434_v16 = vadd.f32 %v1424_v9, %v1378_v12 }
 0x37d   : > { %v1442_v8 = vadd.f32 %v1884_v63, %v1434_v16 }
 0x37f   : > { %v1339_v15 = vpop.f32.mrf.mxu2  ;;  %v1446_v23 = vsel %vm623_vm1, %v1442_v8, 0.0 }
 0x380   : > { %v1380_v47 = vpop.f32.mrf.mxu3  ;;  %v1447_v29 = vadd.f32 %v1446_v23, %v1445_v26 }
 0x381   : > { %v1381_v17 = vadd.f32 %v1380_v47, %v1339_v15 }
 0x383   : > { %v1435_v18 = vadd.f32 %v1427_v14, %v1381_v17  ;;  %v1430_v25 = vpop.f32.mrf.mxu0  ;;  %v1886_v17 = vld [vmem:[%s2414_s15] ss:$0 sm:$0xff] }
 0x385   : > { %v1443_v20 = vadd.f32 %v1884_v63, %v1435_v18 }
 0x387   : > { %v1342_v21 = vpop.f32.mrf.mxu2  ;;  %v1448_v27 = vsel %vm623_vm1, %v1443_v20, 0.0 }
 0x388   : > { %v1383_v22 = vpop.f32.mrf.mxu3  ;;  %v1449_v31 = vadd.f32 %v1448_v27, %v1447_v29 }
 0x389   : > { %v1384_v24 = vadd.f32 %v1383_v22, %v1342_v21 }
 0x38b   : > { %v1436_v28 = vadd.f32 %v1430_v25, %v1384_v24 }
 0x38d   : > { %v1444_v30 = vadd.f32 %v1884_v63, %v1436_v28 }
 0x38f   : > { %v1450_v32 = vsel %vm623_vm1, %v1444_v30, 0.0  ;;  %v2351_v27 = vpop.f32.mrf.mxu2 }
 0x390   : > { %v1451_v33 = vadd.f32 %v1450_v32, %v1449_v31 }
 0x392   : > { %v1452_v34 = vrot.slane %v1451_v33, 4 }
 0x394   : > { %v1453_v35 = vadd.f32 %v1452_v34, %v1451_v33 }
 0x396   : > { %v1454_v36 = vrot.slane %v1453_v35, 2 }
 0x398   : > { %v1455_v37 = vadd.f32 %v1454_v36, %v1453_v35  ;;  %v2355_v36 = vpop.f32.mrf.mxu2 }
 0x39a   : > { %v1456_v38 = vrot.slane %v1455_v37, 1 }
 0x39c   : > { %v1457_v39 = vadd.f32 %v1456_v38, %v1455_v37 }
 0x39e   : > { %1849 = vmatmul.msk.f32.vlgmr.msrb.gmra.mxu1 %vm623_vm1, %v1457_v39 }
 0x41b   : > { %v1479_v44 = vpop.f32.mrf.mxu1 }
 0x41c   : > { %v1482_v45 = vperm.slane %v1479_v44, 0 }
 0x41e   : > { %v1483_v46 = vsub.f32 %v1441_v19, %v1482_v45  ;;  %v1484_v48 = vsub.f32 %v1442_v8, %v1482_v45  ;;  %v1485_v49 = vsub.f32 %v1443_v20, %v1482_v45  ;;  %v1486_v40 = vsub.f32 %v1444_v30, %v1482_v45 }
 0x420   : > { %v1487_v50 = vmul.f32 %v1483_v46, %v1483_v46  ;;  %v1488_v53 = vmul.f32 %v1484_v48, %v1484_v48  ;;  %v1489_v56 = vmul.f32 %v1485_v49, %v1485_v49  ;;  %v1490_v41 = vmul.f32 %v1486_v40, %v1486_v40 }
 0x422   : > { %v1491_v42 = vsel %vm623_vm1, %v1487_v50, 0.0  ;;  %v1492_v43 = vsel %vm623_vm1, %v1488_v53, 0.0  ;;  %v1494_v51 = vsel %vm623_vm1, %v1489_v56, 0.0  ;;  %v1496_v59 = vsel %vm623_vm1, %v1490_v41, 0.0 }
 0x423   : > { %v1493_v58 = vadd.f32 %v1492_v43, %v1491_v42 }
 0x425   : > { %v1495_v52 = vadd.f32 %v1494_v51, %v1493_v58 }
 0x427   : > { %v1497_v55 = vadd.f32 %v1496_v59, %v1495_v52 }
 0x429   : > { %v1498_v60 = vrot.slane %v1497_v55, 4 }
 0x42b   : > { %v1499_v61 = vadd.f32 %v1498_v60, %v1497_v55  ;;  %v1674_v60 = vpop.f32.mrf.mxu2 }
 0x42d   : > { %v1500_v57 = vrot.slane %v1499_v61, 2 }
 0x42f   : > { %v1501_v62 = vadd.f32 %v1500_v57, %v1499_v61 }
 0x431   : > { %v1502_v0 = vrot.slane %v1501_v62, 1 }
 0x433   : > { %v1503_v1 = vadd.f32 %v1502_v0, %v1501_v62 }
 0x435   : > { %1850 = vmatmul.msk.f32.vlgmr.msra.gmra.mxu1 %vm623_vm1, %v1503_v1 }
 0x4b2   : > { %v1524_v2 = vpop.f32.mrf.mxu1 }
 0x4b3   : > { %v1525_v3 = vadd.f32 1e-05, %v1524_v2 }
 0x4b5   : > { %1922 = vrsqrt.f32 %v1525_v3  ;;  %vm1533_vm11 = vweird.f32 %v1525_v3 }
 0x4bb   : > { %v1923_v4 = vpop.eup %1922 }
 0x4bc   : > { %v1528_v5 = vmul.f32 %v1923_v4, %v1525_v3  ;;  %vm1534_vm10 = vweird.f32 %v1923_v4 }
 0x4bd   : > { %vm1535_vm12 = vmor %vm1533_vm11, %vm1534_vm10 }
 0x4be   : > { %v1529_v6 = vmul.f32 %v1923_v4, %v1528_v5 }
 0x4c0   : > { %v1530_v7 = vmul.f32 0.5, %v1529_v6 }
 0x4c2   : > { %v1531_v9 = vsub.f32 1.5, %v1530_v7 }
 0x4c4   : > { %v1532_v10 = vmul.f32 %v1923_v4, %v1531_v9 }
 0x4c6   : > { %v1536_v11 = vsel %vm1535_vm12, %v1923_v4, %v1532_v10 }
 0x4c7   : > { %v1537_v12 = vperm.slane %v1536_v11, 0 }
 0x4c9   : > { %v1538_v14 = vmul.f32 %v1537_v12, %v1483_v46  ;;  %v1539_v15 = vmul.f32 %v1537_v12, %v1484_v48  ;;  %v1540_v47 = vmul.f32 %v1537_v12, %v1485_v49  ;;  %v1541_v16 = vmul.f32 %v1537_v12, %v1486_v40 }
 0x4cb   : > { %v1546_v54 = vmul.f32 %v1885_v13, %v1538_v14  ;;  %v1547_v63 = vmul.f32 %v1885_v13, %v1539_v15  ;;  %v1548_v18 = vmul.f32 %v1885_v13, %v1540_v47  ;;  %v1549_v8 = vmul.f32 %v1885_v13, %v1541_v16  ;;  %v1887_v16 = vld [vmem:[%s2416_s17] ss:$0 sm:$0xff] }
 0x4cd   : > { %v2339_v19 = vadd.f32 %v1886_v17, %v1546_v54  ;;  %v2341_v20 = vadd.f32 %v1886_v17, %v1547_v63  ;;  %v2343_v21 = vadd.f32 %v1886_v17, %v1548_v18  ;;  %v2345_v22 = vadd.f32 %v1886_v17, %v1549_v8 }
 0x4cf   : > { %v1851_v23 = vmul.f32 -1.442695, %v2339_v19  ;;  %v1852_v24 = vmul.f32 -1.442695, %v2341_v20  ;;  %v1853_v25 = vmul.f32 -1.442695, %v2343_v21 }
 0x4d0   : > { %v1854_v26 = vmul.f32 -1.442695, %v2345_v22 }
 0x4d1   : > { %1924 = vpow2.f32 %v1851_v23 }
 0x4d2   : > { %1926 = vpow2.f32 %v1852_v24 }
 0x4d3   : > { %1928 = vpow2.f32 %v1853_v25 }
 0x4d4   : > { %1930 = vpow2.f32 %v1854_v26 }
 0x4d7   : > { %v1925_v28 = vpop.eup %1924 }
 0x4d8   : > { %v1927_v29 = vpop.eup %1926  ;;  %v1570_v30 = vadd.f32 1.0, %v1925_v28 }
 0x4d9   : > { %v1929_v31 = vpop.eup %1928  ;;  %v1571_v32 = vadd.f32 1.0, %v1927_v29  ;;  %v1677_v29 = vpop.f32.mrf.mxu2 }
 0x4da   : > { %v1931_v33 = vpop.eup %1930  ;;  %v1572_v34 = vadd.f32 1.0, %v1929_v31  ;;  %1932 = vrcp.f32 %v1570_v30  ;;  %v1583_v37 = vand.u32 2147483647, %v1570_v30  ;;  %v1585_v38 = vand.u32 2147483648, %v1570_v30 }
 0x4db   : > { %v2353_v35 = vadd.f32 1.0, %v1931_v33  ;;  %1934 = vrcp.f32 %v1571_v32  ;;  %vm1579_vm13 = vweird.f32 %v1570_v30  ;;  %vm1594_vm14 = vweird.f32 %v1571_v32 }
 0x4dc   : > { %1936 = vrcp.f32 %v1572_v34  ;;  %v1598_v49 = vand.u32 2147483647, %v1571_v32  ;;  %v1600_v40 = vand.u32 2147483648, %v1571_v32  ;;  %vm2358_vm15 = vcmp.eq.f32.partialorder %v1583_v37, 8.507059e+37 }
 0x4dd   : > { %1938 = vrcp.f32 %v2353_v35  ;;  %v1586_v56 = vor.u32 1.1754944e-38, %v1585_v38  ;;  %vm1609_vm0 = vweird.f32 %v1572_v34  ;;  %v1613_v58 = vand.u32 2147483647, %v1572_v34 }
 0x4de   : > { %v1615_v51 = vand.u32 2147483648, %v1572_v34  ;;  %vm2363_vm4 = vcmp.eq.f32.partialorder %v1598_v49, 8.507059e+37  ;;  %v1601_v62 = vor.u32 1.1754944e-38, %v1600_v40  ;;  %vm1624_vm7 = vweird.f32 %v2353_v35 }
 0x4df   : > { %v1628_v4 = vand.u32 2147483647, %v2353_v35  ;;  %v1630_v5 = vand.u32 2147483648, %v2353_v35  ;;  %vm1614_vm11 = vcmp.eq.f32.partialorder %v1613_v58, 8.507059e+37 }
 0x4e0   : > { %v1933_v39 = vpop.eup %1932  ;;  %v1616_v12 = vor.u32 1.1754944e-38, %v1615_v51 }
 0x4e1   : > { %v1935_v44 = vpop.eup %1934  ;;  %v1575_v45 = vmul.f32 %v1933_v39, %v1570_v30  ;;  %vm1580_vm2 = vweird.f32 %v1933_v39  ;;  %v1631_v54 = vor.u32 1.1754944e-38, %v1630_v5 }
 0x4e2   : > { %v1937_v46 = vpop.eup %1936  ;;  %v1590_v48 = vmul.f32 %v1935_v44, %v1571_v32  ;;  %vm1595_vm3 = vweird.f32 %v1935_v44  ;;  %vm1581_vm6 = vmor %vm1579_vm13, %vm1580_vm2  ;;  %vm1629_vm13 = vcmp.eq.f32.partialorder %v1628_v4, 8.507059e+37 }
 0x4e3   : > { %v1576_v50 = vsub.f32 1.0, %v1575_v45  ;;  %v1605_v41 = vmul.f32 %v1937_v46, %v1572_v34  ;;  %v1939_v42 = vpop.eup %1938  ;;  %vm1610_vm5 = vweird.f32 %v1937_v46  ;;  %vm1596_vm8 = vmor %vm1594_vm14, %vm1595_vm3 }
 0x4e4   : > { %v1591_v43 = vsub.f32 1.0, %v1590_v48  ;;  %v1620_v55 = vmul.f32 %v1939_v42, %v2353_v35  ;;  %vm1625_vm9 = vweird.f32 %v1939_v42  ;;  %vm1611_vm10 = vmor %vm1609_vm0, %vm1610_vm5 }
 0x4e5   : > { %v1577_v52 = vmul.f32 %v1933_v39, %v1576_v50  ;;  %v1606_v59 = vsub.f32 1.0, %v1605_v41  ;;  %vm1626_vm12 = vmor %vm1624_vm7, %vm1625_vm9 }
 0x4e6   : > { %v1592_v61 = vmul.f32 %v1935_v44, %v1591_v43  ;;  %v1621_v2 = vsub.f32 1.0, %v1620_v55 }
 0x4e7   : > { %v1578_v0 = vadd.f32 %v1933_v39, %v1577_v52  ;;  %v1607_v1 = vmul.f32 %v1937_v46, %v1606_v59 }
 0x4e8   : > { %v1593_v3 = vadd.f32 %v1935_v44, %v1592_v61  ;;  %v1622_v9 = vmul.f32 %v1939_v42, %v1621_v2 }
 0x4e9   : > { %v1582_v6 = vsel %vm1581_vm6, %v1933_v39, %v1578_v0  ;;  %v1608_v7 = vadd.f32 %v1937_v46, %v1607_v1 }
 0x4ea   : > { %v1587_v10 = vsel %vm2358_vm15, %v1586_v56, %v1582_v6  ;;  %v1597_v11 = vsel %vm1596_vm8, %v1935_v44, %v1593_v3  ;;  %v1623_v15 = vadd.f32 %v1939_v42, %v1622_v9 }
 0x4eb   : > { %v1602_v13 = vsel %vm2363_vm4, %v1601_v62, %v1597_v11  ;;  %v1612_v14 = vsel %vm1611_vm10, %v1937_v46, %v1608_v7  ;;  %v1634_v47 = vmul.f32 %v1587_v10, %v2339_v19 }
 0x4ec   : > { %v1617_v17 = vsel %vm1614_vm11, %v1616_v12, %v1612_v14  ;;  %v1635_v63 = vmul.f32 %v1602_v13, %v2341_v20  ;;  %v1627_v18 = vsel %vm1626_vm12, %v1939_v42, %v1623_v15 }
 0x4ed   : > { %v1636_v8 = vmul.f32 %v1617_v17, %v2343_v21  ;;  %v1680_v23 = vadd.f32 %v2351_v27, %v1634_v47  ;;  %v1632_v19 = vsel %vm1629_vm13, %v1631_v54, %v1627_v18 }
 0x4ee   : > { %v1681_v24 = vadd.f32 %v2355_v36, %v1635_v63  ;;  %v1637_v25 = vmul.f32 %v1632_v19, %v2345_v22 }
 0x4ef   : > { %v1682_v26 = vadd.f32 %v1674_v60, %v1636_v8  ;;  %v1688_v28 = vadd.f32 %v1887_v16, %v1680_v23 }
 0x4f0   : > { %v1689_v30 = vadd.f32 %v1887_v16, %v1681_v24  ;;  %v1683_v20 = vadd.f32 %v1677_v29, %v1637_v25 }
 0x4f1   : > { %v1690_v31 = vadd.f32 %v1887_v16, %v1682_v26  ;;  %1692 = vst.msk [vmem:[%s615_s19] sm:$0xff] %vm623_vm1, %v1688_v28 }
 0x4f2   : > { %1693 = vst.msk [vmem:[%s615_s19 + $0x8] sm:$0xff] %vm623_vm1, %v1689_v30  ;;  %v1691_v21 = vadd.f32 %v1887_v16, %v1683_v20 }
 0x4f3   : > { %1694 = vst.msk [vmem:[%s615_s19 + $0x10] sm:$0xff] %vm623_vm1, %v1690_v31 }
 0x4f4   : > { %1695 = vst.msk [vmem:[%s615_s19 + $0x18] sm:$0xff] %vm623_vm1, %v1691_v21 }
 0x4f5 PF: > { %s28_s27 = sadd.s32 1, %s1946_s27  }
 0x4f6   : > { %p25_p4 = scmp.ge.s32.totalorder %s28_s27, 4  }
 0x4f8   :  { %27 = sbr.rel (!%p25_p4) target bundleno = 4 (0x4), region = 136 }

</bundles_post_ra>
